<compile_context>
chip_gen: v7x
topology: tpu7x:2x2x1
jax: 0.10.0
libtpu: 0.0.40
codegen_flags: <defaults>
</compile_context>

<pallas_src>
import functools

import jax
import jax.numpy as jnp
from jax.experimental import pallas as pl
from jax.experimental.pallas import tpu as pltpu


# ----------------------------- Pallas kernel ------------------------------


def _convblock_kernel(x_ref, w_ref, b_ref, o_ref, *, H, W, cin, cout):
    """Fused ReflectionPad2d(1) + Conv2d(3x3) + bias + ELU for one image.

    x_ref: (H, W, cin)      one batch element (batch dim squeezed by BlockSpec)
    w_ref: (9, cin, cout)   tap-major weights, tap index = dh*3 + dw
    b_ref: (1, cout)
    o_ref: (H*W, cout)
    """
    x = x_ref[...]

    # ReflectionPad2d(1) built entirely in VMEM (no HBM padding pass).
    xp = jnp.concatenate([x[1:2], x, x[H - 2:H - 1]], axis=0)            # (H+2, W, cin)
    xp = jnp.concatenate([xp[:, 1:2], xp, xp[:, W - 2:W - 1]], axis=1)   # (H+2, W+2, cin)

    # 3x3 conv as 9 accumulated matmuls on the MXU; accumulation stays in f32 in VMEM.
    acc = jnp.zeros((H * W, cout), jnp.float32)
    for dh in range(3):
        for dw in range(3):
            tap = xp[dh:dh + H, dw:dw + W, :].reshape(H * W, cin)
            acc = acc + jnp.dot(tap, w_ref[dh * 3 + dw],
                                preferred_element_type=jnp.float32)

    y = acc + b_ref[0, :]
    # ELU (alpha = 1): x if x > 0 else exp(x) - 1   (exp runs on the EUP slot)
    y = jnp.where(y > 0, y, jnp.exp(jnp.minimum(y, 0.0)) - 1.0)
    o_ref[...] = y.astype(o_ref.dtype)


# ----------------------------- wrapper ------------------------------


def conv_block(x_nchw, w_oihw, b):
    """Equivalent of ConvBlock.forward. Takes/returns NCHW like the PyTorch module."""
    N, cin, H, W = x_nchw.shape
    cout = w_oihw.shape[0]

    x = jnp.transpose(x_nchw, (0, 2, 3, 1)).astype(jnp.float32)          # NCHW -> NHWC
    # (cout, cin, 3, 3) -> (tap, cin, cout) with tap = dh*3 + dw
    w = jnp.transpose(w_oihw, (2, 3, 1, 0)).reshape(9, cin, cout).astype(jnp.float32)
    b2 = b.reshape(1, cout).astype(jnp.float32)

    kernel = functools.partial(_convblock_kernel, H=H, W=W, cin=cin, cout=cout)
    out = pl.pallas_call(
        kernel,
        out_shape=jax.ShapeDtypeStruct((N, H * W, cout), jnp.float32),
        grid=(N,),
        in_specs=[
            pl.BlockSpec((None, H, W, cin), lambda n: (n, 0, 0, 0)),
            pl.BlockSpec((9, cin, cout), lambda n: (0, 0, 0)),
            pl.BlockSpec((1, cout), lambda n: (0, 0)),
        ],
        out_specs=pl.BlockSpec((None, H * W, cout), lambda n: (n, 0, 0)),
        compiler_params=pltpu.CompilerParams(dimension_semantics=("parallel",)),
    )(x, w, b2)

    y = out.reshape(N, H, W, cout)
    return jnp.transpose(y, (0, 3, 1, 2))                                # NHWC -> NCHW


# ----------------------------- test / demo ------------------------------


if __name__ == "__main__":
    key = jax.random.PRNGKey(0)
    kx, kw, kb = jax.random.split(key, 3)

    N, cin, H, W, cout = 2, 4, 16, 16, 32
    x = jax.random.uniform(kx, (N, cin, H, W), jnp.float32)
    w = jax.random.normal(kw, (cout, cin, 3, 3), jnp.float32) / jnp.sqrt(9.0 * cin)
    b = 0.1 * jax.random.normal(kb, (cout,), jnp.float32)

    out = jax.jit(conv_block)(x, w, b)
    out = jax.block_until_ready(out)

    # Pure-JAX reference (same math, no Pallas) to validate the kernel.
    def reference(x, w, b):
        xh = jnp.transpose(x, (0, 2, 3, 1))
        xp = jnp.pad(xh, ((0, 0), (1, 1), (1, 1), (0, 0)), mode="reflect")
        wt = jnp.transpose(w, (2, 3, 1, 0))                              # (3, 3, cin, cout)
        y = jnp.zeros((N, H, W, cout), jnp.float32)
        for dh in range(3):
            for dw in range(3):
                y = y + jnp.einsum("nhwc,cd->nhwd",
                                   xp[:, dh:dh + H, dw:dw + W, :], wt[dh, dw])
        y = y + b
        y = jnp.where(y > 0, y, jnp.exp(jnp.minimum(y, 0.0)) - 1.0)
        return jnp.transpose(y, (0, 3, 1, 2))

    ref = jax.block_until_ready(reference(x, w, b))

    assert out.shape == (N, cout, H, W), f"bad shape {out.shape}"
    assert bool(jnp.all(jnp.isfinite(out)))
    max_err = float(jnp.max(jnp.abs(out - ref)))
    assert bool(jnp.allclose(out, ref, atol=2e-2, rtol=2e-2)), f"max_err={max_err}"
    print("KERNEL_OK")
</pallas_src>

<mosaic_0001>
module attributes {stable_mosaic.version = 11 : i64} {
  func.func @_convblock_kernel(%arg0: i32, %arg1: memref<1x16x16x4xf32, #tpu.memory_space<vmem>>, %arg2: memref<9x4x32xf32, #tpu.memory_space<vmem>>, %arg3: memref<1x32xf32, #tpu.memory_space<vmem>>, %arg4: memref<1x256x32xf32, #tpu.memory_space<vmem>>) attributes {dimension_semantics = [#tpu.dimension_semantics<parallel>], iteration_bounds = array<i64: 2>, scalar_prefetch = 0 : i64, scratch_operands = 0 : i64, tpu.core_type = #tpu.core_type<tc>, window_params = [{transform_indices = @transform_0, window_bounds = array<i64: 1, 16, 16, 4>}, {pipeline_mode = #tpu.pipeline_mode<synchronous>, transform_indices = @transform_1, window_bounds = array<i64: 9, 4, 32>}, {pipeline_mode = #tpu.pipeline_mode<synchronous>, transform_indices = @transform_2, window_bounds = array<i64: 1, 32>}, {transform_indices = @transform_3, window_bounds = array<i64: 1, 256, 32>}]} {
    %c0 = arith.constant 0 : index
    %c0_0 = arith.constant 0 : index
    %c0_1 = arith.constant 0 : index
    %c0_2 = arith.constant 0 : index
    %0 = vector.load %arg1[%c0, %c0_0, %c0_1, %c0_2] : memref<1x16x16x4xf32, #tpu.memory_space<vmem>>, vector<1x16x16x4xf32>
    %1 = vector.shape_cast %0 : vector<1x16x16x4xf32> to vector<16x16x4xf32>
    %2 = vector.extract_strided_slice %1 {offsets = [1, 0, 0], sizes = [1, 16, 4], strides = [1, 1, 1]} : vector<16x16x4xf32> to vector<1x16x4xf32>
    %3 = vector.extract_strided_slice %1 {offsets = [14, 0, 0], sizes = [1, 16, 4], strides = [1, 1, 1]} : vector<16x16x4xf32> to vector<1x16x4xf32>
    %4 = tpu.concatenate %2, %1, %3 in 0 : vector<1x16x4xf32>, vector<16x16x4xf32>, vector<1x16x4xf32> -> vector<18x16x4xf32>
    %5 = vector.extract_strided_slice %4 {offsets = [0, 1, 0], sizes = [18, 1, 4], strides = [1, 1, 1]} : vector<18x16x4xf32> to vector<18x1x4xf32>
    %6 = vector.extract_strided_slice %4 {offsets = [0, 14, 0], sizes = [18, 1, 4], strides = [1, 1, 1]} : vector<18x16x4xf32> to vector<18x1x4xf32>
    %7 = tpu.concatenate %5, %4, %6 in 1 : vector<18x1x4xf32>, vector<18x16x4xf32>, vector<18x1x4xf32> -> vector<18x18x4xf32>
    %cst = arith.constant 0.000000e+00 : f32
    %8 = vector.broadcast %cst : f32 to vector<256x32xf32>
    %9 = vector.extract_strided_slice %7 {offsets = [0, 0, 0], sizes = [16, 16, 4], strides = [1, 1, 1]} : vector<18x18x4xf32> to vector<16x16x4xf32>
    %10 = vector.shape_cast %9 : vector<16x16x4xf32> to vector<256x4xf32>
    %c0_3 = arith.constant 0 : index
    %c0_4 = arith.constant 0 : index
    %c0_5 = arith.constant 0 : index
    %11 = vector.load %arg2[%c0_3, %c0_4, %c0_5] : memref<9x4x32xf32, #tpu.memory_space<vmem>>, vector<1x4x32xf32>
    %12 = vector.shape_cast %11 : vector<1x4x32xf32> to vector<4x32xf32>
    %cst_6 = arith.constant dense<0.000000e+00> : vector<256x32xf32>
    %13 = tpu.matmul %10, %12, %cst_6 {dimension_numbers = #tpu.dot_dimension_numbers<[1], [0], [0], [1], [0, 0, 1, 1], [], []>} : vector<256x4xf32>, vector<4x32xf32>, vector<256x32xf32> -> vector<256x32xf32>
    %14 = arith.addf %8, %13 : vector<256x32xf32>
    %15 = vector.extract_strided_slice %7 {offsets = [0, 1, 0], sizes = [16, 16, 4], strides = [1, 1, 1]} : vector<18x18x4xf32> to vector<16x16x4xf32>
    %16 = vector.shape_cast %15 : vector<16x16x4xf32> to vector<256x4xf32>
    %c1 = arith.constant 1 : index
    %c0_7 = arith.constant 0 : index
    %c0_8 = arith.constant 0 : index
    %17 = vector.load %arg2[%c1, %c0_7, %c0_8] : memref<9x4x32xf32, #tpu.memory_space<vmem>>, vector<1x4x32xf32>
    %18 = vector.shape_cast %17 : vector<1x4x32xf32> to vector<4x32xf32>
    %cst_9 = arith.constant dense<0.000000e+00> : vector<256x32xf32>
    %19 = tpu.matmul %16, %18, %cst_9 {dimension_numbers = #tpu.dot_dimension_numbers<[1], [0], [0], [1], [0, 0, 1, 1], [], []>} : vector<256x4xf32>, vector<4x32xf32>, vector<256x32xf32> -> vector<256x32xf32>
    %20 = arith.addf %14, %19 : vector<256x32xf32>
    %21 = vector.extract_strided_slice %7 {offsets = [0, 2, 0], sizes = [16, 16, 4], strides = [1, 1, 1]} : vector<18x18x4xf32> to vector<16x16x4xf32>
    %22 = vector.shape_cast %21 : vector<16x16x4xf32> to vector<256x4xf32>
    %c2 = arith.constant 2 : index
    %c0_10 = arith.constant 0 : index
    %c0_11 = arith.constant 0 : index
    %23 = vector.load %arg2[%c2, %c0_10, %c0_11] : memref<9x4x32xf32, #tpu.memory_space<vmem>>, vector<1x4x32xf32>
    %24 = vector.shape_cast %23 : vector<1x4x32xf32> to vector<4x32xf32>
    %cst_12 = arith.constant dense<0.000000e+00> : vector<256x32xf32>
    %25 = tpu.matmul %22, %24, %cst_12 {dimension_numbers = #tpu.dot_dimension_numbers<[1], [0], [0], [1], [0, 0, 1, 1], [], []>} : vector<256x4xf32>, vector<4x32xf32>, vector<256x32xf32> -> vector<256x32xf32>
    %26 = arith.addf %20, %25 : vector<256x32xf32>
    %27 = vector.extract_strided_slice %7 {offsets = [1, 0, 0], sizes = [16, 16, 4], strides = [1, 1, 1]} : vector<18x18x4xf32> to vector<16x16x4xf32>
    %28 = vector.shape_cast %27 : vector<16x16x4xf32> to vector<256x4xf32>
    %c3 = arith.constant 3 : index
    %c0_13 = arith.constant 0 : index
    %c0_14 = arith.constant 0 : index
    %29 = vector.load %arg2[%c3, %c0_13, %c0_14] : memref<9x4x32xf32, #tpu.memory_space<vmem>>, vector<1x4x32xf32>
    %30 = vector.shape_cast %29 : vector<1x4x32xf32> to vector<4x32xf32>
    %cst_15 = arith.constant dense<0.000000e+00> : vector<256x32xf32>
    %31 = tpu.matmul %28, %30, %cst_15 {dimension_numbers = #tpu.dot_dimension_numbers<[1], [0], [0], [1], [0, 0, 1, 1], [], []>} : vector<256x4xf32>, vector<4x32xf32>, vector<256x32xf32> -> vector<256x32xf32>
    %32 = arith.addf %26, %31 : vector<256x32xf32>
    %33 = vector.extract_strided_slice %7 {offsets = [1, 1, 0], sizes = [16, 16, 4], strides = [1, 1, 1]} : vector<18x18x4xf32> to vector<16x16x4xf32>
    %34 = vector.shape_cast %33 : vector<16x16x4xf32> to vector<256x4xf32>
    %c4 = arith.constant 4 : index
    %c0_16 = arith.constant 0 : index
    %c0_17 = arith.constant 0 : index
    %35 = vector.load %arg2[%c4, %c0_16, %c0_17] : memref<9x4x32xf32, #tpu.memory_space<vmem>>, vector<1x4x32xf32>
    %36 = vector.shape_cast %35 : vector<1x4x32xf32> to vector<4x32xf32>
    %cst_18 = arith.constant dense<0.000000e+00> : vector<256x32xf32>
    %37 = tpu.matmul %34, %36, %cst_18 {dimension_numbers = #tpu.dot_dimension_numbers<[1], [0], [0], [1], [0, 0, 1, 1], [], []>} : vector<256x4xf32>, vector<4x32xf32>, vector<256x32xf32> -> vector<256x32xf32>
    %38 = arith.addf %32, %37 : vector<256x32xf32>
    %39 = vector.extract_strided_slice %7 {offsets = [1, 2, 0], sizes = [16, 16, 4], strides = [1, 1, 1]} : vector<18x18x4xf32> to vector<16x16x4xf32>
    %40 = vector.shape_cast %39 : vector<16x16x4xf32> to vector<256x4xf32>
    %c5 = arith.constant 5 : index
    %c0_19 = arith.constant 0 : index
    %c0_20 = arith.constant 0 : index
    %41 = vector.load %arg2[%c5, %c0_19, %c0_20] : memref<9x4x32xf32, #tpu.memory_space<vmem>>, vector<1x4x32xf32>
    %42 = vector.shape_cast %41 : vector<1x4x32xf32> to vector<4x32xf32>
    %cst_21 = arith.constant dense<0.000000e+00> : vector<256x32xf32>
    %43 = tpu.matmul %40, %42, %cst_21 {dimension_numbers = #tpu.dot_dimension_numbers<[1], [0], [0], [1], [0, 0, 1, 1], [], []>} : vector<256x4xf32>, vector<4x32xf32>, vector<256x32xf32> -> vector<256x32xf32>
    %44 = arith.addf %38, %43 : vector<256x32xf32>
    %45 = vector.extract_strided_slice %7 {offsets = [2, 0, 0], sizes = [16, 16, 4], strides = [1, 1, 1]} : vector<18x18x4xf32> to vector<16x16x4xf32>
    %46 = vector.shape_cast %45 : vector<16x16x4xf32> to vector<256x4xf32>
    %c6 = arith.constant 6 : index
    %c0_22 = arith.constant 0 : index
    %c0_23 = arith.constant 0 : index
    %47 = vector.load %arg2[%c6, %c0_22, %c0_23] : memref<9x4x32xf32, #tpu.memory_space<vmem>>, vector<1x4x32xf32>
    %48 = vector.shape_cast %47 : vector<1x4x32xf32> to vector<4x32xf32>
    %cst_24 = arith.constant dense<0.000000e+00> : vector<256x32xf32>
    %49 = tpu.matmul %46, %48, %cst_24 {dimension_numbers = #tpu.dot_dimension_numbers<[1], [0], [0], [1], [0, 0, 1, 1], [], []>} : vector<256x4xf32>, vector<4x32xf32>, vector<256x32xf32> -> vector<256x32xf32>
    %50 = arith.addf %44, %49 : vector<256x32xf32>
    %51 = vector.extract_strided_slice %7 {offsets = [2, 1, 0], sizes = [16, 16, 4], strides = [1, 1, 1]} : vector<18x18x4xf32> to vector<16x16x4xf32>
    %52 = vector.shape_cast %51 : vector<16x16x4xf32> to vector<256x4xf32>
    %c7 = arith.constant 7 : index
    %c0_25 = arith.constant 0 : index
    %c0_26 = arith.constant 0 : index
    %53 = vector.load %arg2[%c7, %c0_25, %c0_26] : memref<9x4x32xf32, #tpu.memory_space<vmem>>, vector<1x4x32xf32>
    %54 = vector.shape_cast %53 : vector<1x4x32xf32> to vector<4x32xf32>
    %cst_27 = arith.constant dense<0.000000e+00> : vector<256x32xf32>
    %55 = tpu.matmul %52, %54, %cst_27 {dimension_numbers = #tpu.dot_dimension_numbers<[1], [0], [0], [1], [0, 0, 1, 1], [], []>} : vector<256x4xf32>, vector<4x32xf32>, vector<256x32xf32> -> vector<256x32xf32>
    %56 = arith.addf %50, %55 : vector<256x32xf32>
    %57 = vector.extract_strided_slice %7 {offsets = [2, 2, 0], sizes = [16, 16, 4], strides = [1, 1, 1]} : vector<18x18x4xf32> to vector<16x16x4xf32>
    %58 = vector.shape_cast %57 : vector<16x16x4xf32> to vector<256x4xf32>
    %c8 = arith.constant 8 : index
    %c0_28 = arith.constant 0 : index
    %c0_29 = arith.constant 0 : index
    %59 = vector.load %arg2[%c8, %c0_28, %c0_29] : memref<9x4x32xf32, #tpu.memory_space<vmem>>, vector<1x4x32xf32>
    %60 = vector.shape_cast %59 : vector<1x4x32xf32> to vector<4x32xf32>
    %cst_30 = arith.constant dense<0.000000e+00> : vector<256x32xf32>
    %61 = tpu.matmul %58, %60, %cst_30 {dimension_numbers = #tpu.dot_dimension_numbers<[1], [0], [0], [1], [0, 0, 1, 1], [], []>} : vector<256x4xf32>, vector<4x32xf32>, vector<256x32xf32> -> vector<256x32xf32>
    %62 = arith.addf %56, %61 : vector<256x32xf32>
    %c0_31 = arith.constant 0 : index
    %c0_32 = arith.constant 0 : index
    %63 = vector.load %arg3[%c0_31, %c0_32] : memref<1x32xf32, #tpu.memory_space<vmem>>, vector<1x32xf32>
    %64 = vector.shape_cast %63 : vector<1x32xf32> to vector<32xf32>
    %65 = vector.shape_cast %64 : vector<32xf32> to vector<1x32xf32>
    %66 = vector.broadcast %65 : vector<1x32xf32> to vector<256x32xf32>
    %67 = arith.addf %62, %66 : vector<256x32xf32>
    %cst_33 = arith.constant 0.000000e+00 : f32
    %68 = vector.broadcast %cst_33 : f32 to vector<256x32xf32>
    %69 = arith.cmpf ogt, %67, %68 : vector<256x32xf32>
    %cst_34 = arith.constant 0.000000e+00 : f32
    %70 = vector.broadcast %cst_34 : f32 to vector<256x32xf32>
    %71 = arith.minimumf %67, %70 : vector<256x32xf32>
    %72 = math.exp %71 : vector<256x32xf32>
    %cst_35 = arith.constant 1.000000e+00 : f32
    %73 = vector.broadcast %cst_35 : f32 to vector<256x32xf32>
    %74 = arith.subf %72, %73 : vector<256x32xf32>
    %75 = arith.select %69, %67, %74 : vector<256x32xi1>, vector<256x32xf32>
    %c0_36 = arith.constant 0 : index
    %c0_37 = arith.constant 0 : index
    %c0_38 = arith.constant 0 : index
    %76 = vector.load %arg4[%c0_36, %c0_37, %c0_38] : memref<1x256x32xf32, #tpu.memory_space<vmem>>, vector<1x256x32xf32>
    %77 = vector.shape_cast %76 : vector<1x256x32xf32> to vector<256x32xf32>
    %78 = vector.shape_cast %75 : vector<256x32xf32> to vector<1x256x32xf32>
    tpu.vector_store %arg4[%c0_36, %c0_37, %c0_38], %78 {strides = array<i32>} : memref<1x256x32xf32, #tpu.memory_space<vmem>>, vector<1x256x32xf32>,
    return
  }
  func.func @transform_0(%arg0: i32) -> (i32, i32, i32, i32) {
    %c0_i32 = arith.constant 0 : i32
    %c0_i32_0 = arith.constant 0 : i32
    %c0_i32_1 = arith.constant 0 : i32
    %c0_i32_2 = arith.constant 0 : i32
    return %arg0, %c0_i32, %c0_i32_0, %c0_i32_1 : i32, i32, i32, i32
  }
  func.func @transform_1(%arg0: i32) -> (i32, i32, i32) {
    %c0_i32 = arith.constant 0 : i32
    %c0_i32_0 = arith.constant 0 : i32
    %c0_i32_1 = arith.constant 0 : i32
    %c0_i32_2 = arith.constant 0 : i32
    return %c0_i32, %c0_i32_0, %c0_i32_1 : i32, i32, i32
  }
  func.func @transform_2(%arg0: i32) -> (i32, i32) {
    %c0_i32 = arith.constant 0 : i32
    %c0_i32_0 = arith.constant 0 : i32
    %c0_i32_1 = arith.constant 0 : i32
    return %c0_i32, %c0_i32_0 : i32, i32
  }
  func.func @transform_3(%arg0: i32) -> (i32, i32, i32) {
    %c0_i32 = arith.constant 0 : i32
    %c0_i32_0 = arith.constant 0 : i32
    %c0_i32_1 = arith.constant 0 : i32
    return %arg0, %c0_i32, %c0_i32_0 : i32, i32, i32
  }
}

</mosaic_0001>

<bundles_post_ra>
// kernel: conv_block.1
= control target key start
LH: loop header
LB: loop body
LE: loop exit
PB: predicated region body
PF: predicated region fallthrough
CT: control target
= control target key end

     0   :  { %8 = vsyncpa [#allocation3], 0  ;;  %s6485_s0 = inlined_call_operand.vmem [shape: f32[2,16,16,4], index: 0, kind: input, shape index: {}]   ;;  %s6486_s1 = inlined_call_operand.vmem [shape: f32[9,4,32], index: 1, kind: input, shape index: {}]   ;;  %s6487_s2 = inlined_call_operand.vmem [shape: f32[1,32], index: 2, kind: input, shape index: {}]   ;;  %s6488_s3 = inlined_call_operand.hbm [shape: f32[2,256,32], index: 3, kind: output, shape index: {}]  }
   0x1   :  { %10 = vsyncpa [#allocation3 + $0x1], 0  ;;  %s4981_s12 = smov 0   ;;  %s4983_s13 = smov 0  }
   0x2   :  { %s4985_s14 = smov 0   ;;  %s4987_s15 = smov 0  }
   0x3 LB: > { %s5002_s16 = sadd.s32 4294967295, %s4956_s15   ;;  %s3431_s17 = sadd.s32 4294967294, %s4956_s15   ;;  %s4956_s15 = sphi %s4987_s15, %s6649_s15   ;;  %s4952_s14 = sphi %s4985_s14, %s6648_s14   ;;  %s4948_s13 = sphi %s4983_s13, %s6647_s13   ;;  %s4944_s12 = sphi %s4981_s12, %s6646_s12  }
   0x4   : > { %s5006_s18 = sadd.s32 1, %s4956_s15   ;;  %s91_s19 = sadd.s32 1, %s4952_s14 }
   0x5   : > { %s88_s20 = ssub.s32 %s4956_s15, %s5006_s18  ;;  %p101_p0 = scmp.ne.s32.totalorder %s4952_s14, %s4948_s13 }
   0x6   : > { %p89_p1 = scmp.eq.s32.totalorder %s88_s20, 0  ;;  %p102_p2 = scmp.eq.s32.totalorder %s5002_s16, 1 }
   0x7   : > { %p107_p3 = scmp.ne.s32.totalorder %s4948_s13, %s4944_s12  ;;  %p108_p4 = scmp.eq.s32.totalorder %s3431_s17, 1 }
   0x8   : > { %s5017_s21 = scalar_select %p89_p1, %s4952_s14, %s91_s19  }
   0x9   : > { %p5019_p5 = por %p102_p2, %p101_p0  ;;  %p5023_p6 = por %p108_p4, %p107_p3 }
   0xa   : > { %p3434_p7 = scmp.ge.s32.totalorder %s4956_s15, 1  ;;  %p140_p8 = scmp.lt.s32.totalorder %s4956_s15, 3 }
   0xc   : > { %p141_p9 = pnand %p3434_p7, %p140_p8 }
   0xe   : > { %144 = sbr.rel (%p141_p9) target bundleno = 571 (0x23b), region = 32 }
  0x15   : > { %v3438_v0 = vld [vmem:[%s6486_s1 + $0x4] sm:$0xf]  ;;  %vm580_vm0 = vcmask 1043456   ;;  %v5035_v1 = vld [vmem:[%s6486_s1 + $0x10] sm:$0xf]  ;;  %p164_p10 = scmp.lt.s32.totalorder %s5002_s16, 1 }
  0x16   : > { %6557 = vst [vmem:[#allocation5_spill] sm:$0xff] %v5035_v1  ;;  %4080 = vmatprep.subr.msk.mxu1 %vm580_vm0, %v3438_v0  ;;  %4280 = vmatprep.subr.msk.mxu0 %vm580_vm0, %v5035_v1  ;;  %v5044_v2 = vld [vmem:[%s6486_s1] sm:$0xf]  ;;  %v3607_v3 = vld [vmem:[%s6486_s1 + $0x14] sm:$0xf]  ;;  %vm265_vm1 = vcmask 1040384  }
  0x17   : > { %4081 = vmatpush3.msk.msra.mxu1 %vm580_vm0, %v3438_v0  ;;  %4281 = vmatpush3.msk.msra.mxu0 %vm580_vm0, %v5035_v1  ;;  %s165_s30 = scalar_select %p164_p10, %s5002_s16, 1  ;;  %vm441_vm2 = vcmask 1046528   ;;  %vm519_vm3 = vcmask 31744   ;;  %v5122_v49 = vld [vmem:[%s6486_s1 + $0x18] sm:$0xf]  ;;  %vm1097_vm4 = vcmask 1045504  }
  0x18   : > { %4130 = vmatprep.subr.msk.mxu1 %vm580_vm0, %v5044_v2  ;;  %4330 = vmatprep.subr.msk.mxu0 %vm580_vm0, %v3607_v3  ;;  %v5127_v50 = vld [vmem:[%s6486_s1 + $0x8] sm:$0xf]  ;;  %vm3322_vm5 = vcmask 261120   ;;  %s4958_s24 = smov [#allocation2]  }
  0x19   : > { %s3781_s6 = sshll.u32 %s165_s30, 8  ;;  %s4898_s25 = sshll.u32 %s4958_s24, 4  ;;  %s4899_s25 = int_to_ptr.vmem [resolvable:$false] %s4898_s25 }
  0x1a   : > { %s5059_s9 = scalar_lea.vmem %s6485_s0, %s3781_s6  ;;  %s161_s6 = sand.u32 1, %s4948_s13  }
  0x1b   : > { %v171_v4 = vld [vmem:[%s5059_s9 + $0x10] sm:$0xff]  ;;  %v172_v5 = vld [vmem:[%s5059_s9 + $0x18] sm:$0xff]  ;;  %v169_v6 = vld [vmem:[%s5059_s9] sm:$0xff]  ;;  %s3435_s7 = sshll.u32 %s161_s6, 8  ;;  %s4900_s26 = scalar_lea.vmem %s4899_s25, 8192 }
  0x1c   : > { %v217_v7 = vrot.slane %v171_v4, 1  ;;  %v266_v8 = vrot.slane %v171_v4, 7  ;;  %v267_v9 = vrot.slane %v172_v5, 7  ;;  %v170_v10 = vld [vmem:[%s5059_s9 + $0x8] sm:$0xff]  ;;  %v218_v11 = vrot.slane %v169_v6, 1  ;;  %v173_v12 = vld [vmem:[%s5059_s9 + $0x20] sm:$0xff] }
  0x1d   : > { %v269_v13 = vrot.slane %v169_v6, 7  ;;  %v270_v14 = vrot.slane %v170_v10, 7  ;;  %v346_v15 = vrot.slane %v172_v5, 5  ;;  %v347_v16 = vrot.slane %v170_v10, 5  ;;  %v174_v25 = vld [vmem:[%s5059_s9 + $0x28] sm:$0xff]  ;;  %v175_v30 = vld [vmem:[%s5059_s9 + $0x30] sm:$0xff] }
  0x1e   : > { %v5067_v17 = vsel %vm265_vm1, %v266_v8, %v267_v9  ;;  %v5070_v18 = vsel %vm265_vm1, %v217_v7, %v266_v8  ;;  %v219_v19 = vrot.slane %v173_v12, 1  ;;  %v272_v20 = vrot.slane %v173_v12, 7  ;;  %v176_v34 = vld [vmem:[%s5059_s9 + $0x38] sm:$0xff]  ;;  %v177_v39 = vld [vmem:[%s5059_s9 + $0x40] sm:$0xff]  ;;  %v178_v44 = vld [vmem:[%s5059_s9 + $0x48] sm:$0xff]  ;;  %s6209_s8 = scalar_lea.vmem [#allocation2], %s3435_s7 }
  0x1f   : > { %v442_v21 = vrot.slane %v5070_v18, 1  ;;  %v443_v22 = vrot.slane %v5067_v17, 1  ;;  %v5075_v23 = vsel %vm265_vm1, %v269_v13, %v270_v14  ;;  %v5078_v24 = vsel %vm265_vm1, %v218_v11, %v269_v13  ;;  %v179_v63 = vld [vmem:[%s5059_s9 + $0x50] sm:$0xff]  ;;  %v180_v0 = vld [vmem:[%s5059_s9 + $0x58] sm:$0xff]  ;;  %v181_v10 = vld [vmem:[%s5059_s9 + $0x60] sm:$0xff]  ;;  %s3369_s10 = sshll.u32 %s6209_s8, 4  ;;  %s6434_s10 = int_to_ptr.vmem [resolvable:$true] %s3369_s10 }
  0x20   : > { %v447_v26 = vrot.slane %v5078_v24, 1  ;;  %v448_v27 = vrot.slane %v5075_v23, 1  ;;  %v5084_v28 = vsel %vm265_vm1, %v267_v9, %v346_v15  ;;  %v5087_v29 = vsel %vm265_vm1, %v270_v14, %v347_v16  ;;  %s4894_s20 = scalar_lea.vmem %s6434_s10, 4096  ;;  %p4901_p0 = scmp.lt.s32.totalorder %s6434_s10, %s4899_s25 }
  0x21   : > { %v5091_v31 = vsel %vm441_vm2, %v442_v21, %v443_v22  ;;  %v445_v32 = vrot.slane %v5084_v28, 1  ;;  %v450_v33 = vrot.slane %v5087_v29, 1  ;;  %v273_v36 = vrot.slane %v174_v25, 7  ;;  %p4895_p11 = scmp.ne.s32.totalorder %s6434_s10, %s4894_s20  ;;  %p4902_p1 = scmp.lt.s32.totalorder %s4900_s26, %s4894_s20 }
  0x22   : > { %6558 = vst [vmem:[#allocation6_spill] sm:$0xff] %v5091_v31  ;;  %4082 = vmatprep.mubr.msk.f32.mxu1 %vm519_vm3, %v5091_v31  ;;  %v449_v35 = vsel %vm441_vm2, %v447_v26, %v448_v27  ;;  %v5100_v37 = vsel %vm265_vm1, %v219_v19, %v272_v20  ;;  %v348_v38 = vrot.slane %v174_v25, 5  ;;  %v220_v43 = vrot.slane %v175_v30, 1  ;;  %v182_v19 = vld [vmem:[%s5059_s9 + $0x68] sm:$0xff]  ;;  %v183_v26 = vld [vmem:[%s5059_s9 + $0x70] sm:$0xff] }
  0x23   : > { %4282 = vmatprep.mubr.msk.f32.mxu0 %vm519_vm3, %v449_v35  ;;  %v5105_v40 = vsel %vm441_vm2, %v443_v22, %v445_v32  ;;  %v451_v41 = vsel %vm441_vm2, %v448_v27, %v450_v33  ;;  %v452_v42 = vrot.slane %v5100_v37, 1  ;;  %v5114_v45 = vsel %vm265_vm1, %v272_v20, %v273_v36  ;;  %p4896_p12 = pnand %p4895_p11, %p5019_p5  ;;  %p4903_p2 = por %p4902_p1, %p4901_p0 }
  0x24   : > { %6559 = vst [vmem:[#allocation7_spill] sm:$0xff] %v5105_v40  ;;  %4083 = vmatmul.mubr.msk.f32.vlgmr.msra.gmra.mrb[0].mxu1 %vm519_vm3, %v5105_v40  ;;  %4283 = vmatmul.mubr.msk.f32.vlgmr.msra.gmra.mrb[0].mxu0 %vm519_vm3, %v451_v41  ;;  %v5117_v46 = vsel %vm265_vm1, %v273_v36, %v348_v38  ;;  %v275_v47 = vrot.slane %v175_v30, 7  ;;  %v276_v48 = vrot.slane %v176_v34, 7  ;;  %v453_v51 = vrot.slane %v5114_v45, 1 }
  0x25   : > { %4131 = vmatpush3.msk.msra.mxu1 %vm580_vm0, %v5044_v2  ;;  %4331 = vmatpush3.msk.msra.mxu0 %vm580_vm0, %v3607_v3  ;;  %v455_v52 = vrot.slane %v5117_v46, 1  ;;  %v349_v53 = vrot.slane %v176_v34, 5  ;;  %v221_v54 = vrot.slane %v177_v39, 1  ;;  %v278_v57 = vrot.slane %v177_v39, 7  ;;  %v184_v34 = vld [vmem:[%s5059_s9 + $0x78] sm:$0xff]  ;;  %p4897_p13 = pneg %p4896_p12 }
  0x26   : > { %4085 = vmatprep.mubr.msk.f32.mxu1 %vm519_vm3, %v449_v35  ;;  %4285 = vmatprep.mubr.msk.f32.mxu0 %vm519_vm3, %v5091_v31  ;;  %v5138_v55 = vsel %vm265_vm1, %v275_v47, %v276_v48  ;;  %v5141_v56 = vsel %vm265_vm1, %v220_v43, %v275_v47  ;;  %v279_v58 = vrot.slane %v178_v44, 7  ;;  %v5144_v59 = vsel %vm441_vm2, %v452_v42, %v453_v51 }
  0x27   : > { %6560 = vst [vmem:[#allocation8_spill] sm:$0xff] %v5144_v59  ;;  %v5147_v60 = vsel %vm441_vm2, %v453_v51, %v455_v52  ;;  %v457_v61 = vrot.slane %v5141_v56, 1  ;;  %v458_v62 = vrot.slane %v5138_v55, 1  ;;  %4380 = vmatprep.subr.msk.mxu0 %vm580_vm0, %v5122_v49  ;;  %4180 = vmatprep.subr.msk.mxu1 %vm580_vm0, %v5127_v50  ;;  %v5161_v2 = vsel %vm265_vm1, %v276_v48, %v349_v53  ;;  %p4904_p3 = pnand %p4903_p2, %p4897_p13 }
  0x28   : > { %6561 = vst [vmem:[#allocation9_spill] sm:$0xff] %v5147_v60  ;;  %4086 = vmatmul.mubr.msk.f32.gmra.mrb[2].mxu1 %vm519_vm3, %v451_v41  ;;  %4286 = vmatmul.mubr.msk.f32.gmra.mrb[2].mxu0 %vm519_vm3, %v5105_v40  ;;  %v5164_v3 = vsel %vm265_vm1, %v278_v57, %v279_v58  ;;  %v5167_v4 = vsel %vm265_vm1, %v221_v54, %v278_v57  ;;  %v350_v5 = vrot.slane %v178_v44, 5  ;;  %v460_v7 = vrot.slane %v5161_v2, 1 }
  0x29   : > { %4088 = vmatprep.mubr.msk.f32.mxu1 %vm519_vm3, %v5091_v31  ;;  %4288 = vmatprep.mubr.msk.f32.mxu0 %vm519_vm3, %v5144_v59  ;;  %v5174_v6 = vsel %vm441_vm2, %v457_v61, %v458_v62  ;;  %v462_v8 = vrot.slane %v5167_v4, 1  ;;  %v463_v9 = vrot.slane %v5164_v3, 1  ;;  %v222_v12 = vrot.slane %v179_v63, 1  ;;  %v195_v31 = vld [vmem:[%s5059_s9 + $0xd0] sm:$0xff] }
  0x2a   : > { %6562 = vst [vmem:[#allocation10_spill] sm:$0xff] %v5174_v6  ;;  %v5181_v11 = vsel %vm265_vm1, %v279_v58, %v350_v5  ;;  %v281_v13 = vrot.slane %v179_v63, 7  ;;  %v282_v14 = vrot.slane %v180_v0, 7  ;;  %v5184_v15 = vsel %vm441_vm2, %v458_v62, %v460_v7  ;;  %v185_v62 = vld [vmem:[%s5059_s9 + $0x80] sm:$0xff]  ;;  %v186_v63 = vld [vmem:[%s5059_s9 + $0x88] sm:$0xff] }
  0x2b   : > { %6563 = vst [vmem:[#allocation11_spill] sm:$0xff] %v5184_v15  ;;  %v351_v16 = vrot.slane %v180_v0, 5  ;;  %v223_v22 = vrot.slane %v181_v10, 1  ;;  %v284_v25 = vrot.slane %v181_v10, 7  ;;  %v5203_v27 = vsel %vm441_vm2, %v462_v8, %v463_v9 }
  0x2c   : > { %4089 = vmatmul.mubr.msk.f32.gmra.mrb[4].mxu1 %vm519_vm3, %v5105_v40  ;;  %4289 = vmatmul.mubr.msk.f32.gmra.mrb[4].mxu0 %vm519_vm3, %v5147_v60  ;;  %v5192_v20 = vsel %vm265_vm1, %v281_v13, %v282_v14  ;;  %v5195_v21 = vsel %vm265_vm1, %v222_v12, %v281_v13  ;;  %6564 = vst [vmem:[#allocation12_spill] sm:$0xff] %v5203_v27  ;;  %v465_v30 = vrot.slane %v5181_v11, 1  ;;  %v285_v36 = vrot.slane %v182_v19, 7 }
  0x2d   : > { %4091 = vmatprep.mubr.msk.f32.mxu1 %vm519_vm3, %v5144_v59  ;;  %4291 = vmatprep.mubr.msk.f32.mxu0 %vm519_vm3, %v5174_v6  ;;  %v467_v32 = vrot.slane %v5195_v21, 1  ;;  %v468_v33 = vrot.slane %v5192_v20, 1  ;;  %v5210_v35 = vsel %vm265_vm1, %v282_v14, %v351_v16  ;;  %v5213_v38 = vsel %vm265_vm1, %v223_v22, %v284_v25  ;;  %v188_v16 = vld [vmem:[%s5059_s9 + $0x98] sm:$0xff] }
  0x2e   : > { %v352_v39 = vrot.slane %v182_v19, 5  ;;  %v224_v41 = vrot.slane %v183_v26, 1  ;;  %v287_v42 = vrot.slane %v183_v26, 7  ;;  %v5220_v43 = vsel %vm265_vm1, %v284_v25, %v285_v36 }
  0x2f   : > { %v288_v44 = vrot.slane %v184_v34, 7  ;;  %v5227_v47 = vsel %vm441_vm2, %v463_v9, %v465_v30  ;;  %v5230_v48 = vsel %vm441_vm2, %v467_v32, %v468_v33  ;;  %v470_v51 = vrot.slane %v5210_v35, 1  ;;  %v187_v9 = vld [vmem:[%s5059_s9 + $0x90] sm:$0xff] }
  0x30   : > { %4092 = vmatmul.mubr.msk.f32.gmra.mrb[6].mxu1 %vm519_vm3, %v5147_v60  ;;  %4292 = vmatmul.mubr.msk.f32.gmra.mrb[6].mxu0 %vm519_vm3, %v5184_v15  ;;  %6565 = vst [vmem:[#allocation13_spill] sm:$0xff] %v5227_v47  ;;  %6566 = vst [vmem:[#allocation14_spill] sm:$0xff] %v5230_v48  ;;  %v472_v52 = vrot.slane %v5213_v38, 1  ;;  %v473_v53 = vrot.slane %v5220_v43, 1  ;;  %v5236_v54 = vsel %vm265_vm1, %v285_v36, %v352_v39  ;;  %v353_v58 = vrot.slane %v184_v34, 5  ;;  %v189_v39 = vld [vmem:[%s5059_s9 + $0xa0] sm:$0xff] }
  0x31   : > { %4094 = vmatprep.mubr.msk.f32.mxu1 %vm519_vm3, %v5174_v6  ;;  %4294 = vmatprep.mubr.msk.f32.mxu0 %vm519_vm3, %v5203_v27  ;;  %v5239_v57 = vsel %vm265_vm1, %v224_v41, %v287_v42  ;;  %v5242_v61 = vsel %vm265_vm1, %v287_v42, %v288_v44  ;;  %v5255_v0 = vsel %vm441_vm2, %v468_v33, %v470_v51  ;;  %v475_v5 = vrot.slane %v5236_v54, 1  ;;  %v193_v60 = vld [vmem:[%s5059_s9 + $0xc0] sm:$0xff] }
  0x32   : > { %6567 = vst [vmem:[#allocation15_spill] sm:$0xff] %v5255_v0  ;;  %v477_v7 = vrot.slane %v5239_v57, 1  ;;  %v1103_v8 = vrot.slane %v5078_v24, 2  ;;  %v5262_v10 = vsel %vm441_vm2, %v472_v52, %v473_v53  ;;  %v478_v12 = vrot.slane %v5242_v61, 1 }
  0x33   : > { %6568 = vst [vmem:[#allocation16_spill] sm:$0xff] %v5262_v10  ;;  %v5266_v13 = vsel %vm265_vm1, %v288_v44, %v353_v58  ;;  %v1104_v14 = vrot.slane %v5075_v23, 2  ;;  %v225_v19 = vrot.slane %v185_v62, 1  ;;  %v290_v22 = vrot.slane %v185_v62, 7  ;;  %v190_v44 = vld [vmem:[%s5059_s9 + $0xa8] sm:$0xff] }
  0x34   : > { %4095 = vmatmul.mubr.msk.f32.gmra.mrb[8].mxu1 %vm519_vm3, %v5184_v15  ;;  %4295 = vmatmul.mubr.msk.f32.gmra.mrb[8].mxu0 %vm519_vm3, %v5227_v47  ;;  %v291_v25 = vrot.slane %v186_v63, 7  ;;  %v354_v26 = vrot.slane %v186_v63, 5  ;;  %v226_v30 = vrot.slane %v187_v9, 1  ;;  %v293_v32 = vrot.slane %v187_v9, 7  ;;  %v5364_v15 = vld [vmem:[%s6486_s1 + $0x1c] sm:$0xf] }
  0x35   : > { %4097 = vmatprep.mubr.msk.f32.mxu1 %vm519_vm3, %v5203_v27  ;;  %4297 = vmatprep.mubr.msk.f32.mxu0 %vm519_vm3, %v5230_v48  ;;  %v5279_v33 = vsel %vm441_vm2, %v473_v53, %v475_v5  ;;  %v480_v34 = vrot.slane %v5266_v13, 1  ;;  %v294_v36 = vrot.slane %v188_v16, 7  ;;  %v1106_v41 = vrot.slane %v5087_v29, 2 }
  0x36   : > { %6569 = vst [vmem:[#allocation17_spill] sm:$0xff] %v5279_v33  ;;  %v5285_v42 = vsel %vm441_vm2, %v477_v7, %v478_v12  ;;  %v5289_v51 = vsel %vm1097_vm4, %v1103_v8, %v1104_v14  ;;  %v5292_v52 = vsel %vm265_vm1, %v290_v22, %v291_v25  ;;  %v5295_v58 = vsel %vm265_vm1, %v225_v19, %v290_v22 }
  0x37   : > { %6570 = vst [vmem:[#allocation18_spill] sm:$0xff] %v5285_v42  ;;  %6571 = vst [vmem:[#allocation19_spill] sm:$0xff] %v5289_v51  ;;  %v5298_v53 = vsel %vm265_vm1, %v291_v25, %v354_v26  ;;  %v5305_v29 = vsel %vm265_vm1, %v226_v30, %v293_v32  ;;  %v355_v62 = vrot.slane %v188_v16, 5  ;;  %v227_v63 = vrot.slane %v189_v39, 1  ;;  %v191_v30 = vld [vmem:[%s5059_s9 + $0xb0] sm:$0xff] }
  0x38   : > { %4098 = vmatmul.mubr.msk.f32.gmra.mrb[10].mxu1 %vm519_vm3, %v5227_v47  ;;  %4298 = vmatmul.mubr.msk.f32.gmra.mrb[10].mxu0 %vm519_vm3, %v5255_v0  ;;  %v296_v5 = vrot.slane %v189_v39, 7  ;;  %v5312_v7 = vsel %vm441_vm2, %v478_v12, %v480_v34  ;;  %v1098_v8 = vrot.slane %v5070_v18, 2  ;;  %v5316_v9 = vsel %vm265_vm1, %v293_v32, %v294_v36  ;;  %v5324_v39 = vld [vmem:[%s5059_s9 + $0xb8] sm:$0xff] }
  0x39   : > { %4100 = vmatprep.mubr.msk.f32.mxu1 %vm519_vm3, %v5230_v48  ;;  %4300 = vmatprep.mubr.msk.f32.mxu0 %vm519_vm3, %v5262_v10  ;;  %6572 = vst [vmem:[#allocation20_spill] sm:$0xff] %v5312_v7  ;;  %v297_v19 = vrot.slane %v190_v44, 7  ;;  %v482_v22 = vrot.slane %v5295_v58, 1  ;;  %v483_v16 = vrot.slane %v5292_v52, 1  ;;  %v1099_v25 = vrot.slane %v5067_v17, 2 }
  0x3a   : > { %v1101_v26 = vrot.slane %v5084_v28, 2  ;;  %v5327_v12 = vsel %vm1097_vm4, %v1104_v14, %v1106_v41  ;;  %v485_v34 = vrot.slane %v5298_v53, 1  ;;  %v487_v32 = vrot.slane %v5305_v29, 1 }
  0x3b   : > { %6573 = vst [vmem:[#allocation21_spill] sm:$0xff] %v5327_v12  ;;  %v488_v28 = vrot.slane %v5316_v9, 1  ;;  %v5339_v48 = vsel %vm265_vm1, %v294_v36, %v355_v62  ;;  %v5342_v14 = vsel %vm265_vm1, %v227_v63, %v296_v5  ;;  %v5349_v41 = vsel %vm265_vm1, %v296_v5, %v297_v19 }
  0x3c   : > { %4101 = vmatmul.mubr.msk.f32.gmra.mrb[12].mxu1 %vm519_vm3, %v5255_v0  ;;  %4301 = vmatmul.mubr.msk.f32.gmra.mrb[12].mxu0 %vm519_vm3, %v5279_v33  ;;  %v1109_v0 = vrot.slane %v5114_v45, 2  ;;  %v299_v47 = vrot.slane %v191_v30, 7  ;;  %v300_v27 = vrot.slane %v5324_v39, 7  ;;  %v5353_v36 = vsel %vm441_vm2, %v482_v22, %v483_v16 }
  0x3d   : > { %4103 = vmatprep.mubr.msk.f32.mxu1 %vm519_vm3, %v5262_v10  ;;  %4303 = vmatprep.mubr.msk.f32.mxu0 %vm519_vm3, %v5285_v42  ;;  %v1108_v10 = vrot.slane %v5100_v37, 2  ;;  %6574 = vst [vmem:[#allocation22_spill] sm:$0xff] %v5353_v36  ;;  %v5356_v62 = vsel %vm1097_vm4, %v1098_v8, %v1099_v25  ;;  %v5359_v63 = vsel %vm1097_vm4, %v1099_v25, %v1101_v26  ;;  %v1111_v5 = vrot.slane %v5117_v46, 2  ;;  %v194_v8 = vld [vmem:[%s5059_s9 + $0xc8] sm:$0xff] }
  0x3e   : > { %6575 = vst [vmem:[#allocation23_spill] sm:$0xff] %v5356_v62  ;;  %6576 = vst [vmem:[#allocation24_spill] sm:$0xff] %v5359_v63  ;;  %v1113_v6 = vrot.slane %v5141_v56, 2  ;;  %v1114_v22 = vrot.slane %v5138_v55, 2  ;;  %v5377_v25 = vsel %vm441_vm2, %v483_v16, %v485_v34  ;;  %v492_v46 = vrot.slane %v5342_v14, 1 }
  0x3f   : > { %6577 = vst [vmem:[#allocation25_spill] sm:$0xff] %v5377_v25  ;;  %v5380_v26 = vsel %vm1097_vm4, %v1108_v10, %v1109_v0  ;;  %v5395_v10 = vsel %vm265_vm1, %v299_v47, %v300_v27  ;;  %v357_v34 = vrot.slane %v5324_v39, 5  ;;  %v229_v59 = vrot.slane %v193_v60, 1 }
  0x40   : > { %4104 = vmatmul.mubr.msk.f32.gmra.mrb[14].mxu1 %vm519_vm3, %v5279_v33  ;;  %4304 = vmatmul.mubr.msk.f32.gmra.mrb[14].mxu0 %vm519_vm3, %v5312_v7  ;;  %v356_v33 = vrot.slane %v190_v44, 5  ;;  %v490_v44 = vrot.slane %v5339_v48, 1  ;;  %6578 = vst [vmem:[#allocation26_spill] sm:$0xff] %v5380_v26  ;;  %v303_v40 = vrot.slane %v194_v8, 7  ;;  %v5412_v39 = vsel %vm1097_vm4, %v1113_v6, %v1114_v22 }
  0x41   : > { %4106 = vmatprep.mubr.msk.f32.mxu1 %vm519_vm3, %v5285_v42  ;;  %4332 = vmatprep.mubr.msk.f32.mxu0 %vm519_vm3, %v5289_v51  ;;  %v228_v42 = vrot.slane %v191_v30, 1  ;;  %v493_v30 = vrot.slane %v5349_v41, 1  ;;  %6582 = vst [vmem:[#allocation30_spill] sm:$0xff] %v5412_v39  ;;  %v1119_v6 = vrot.slane %v5164_v3, 2  ;;  %v230_v1 = vrot.slane %v195_v31, 1  ;;  %v198_v51 = vld [vmem:[%s5059_s9 + $0xe8] sm:$0xff] }
  0x42   : > { %v5392_v16 = vsel %vm265_vm1, %v297_v19, %v356_v33  ;;  %v5406_v33 = vsel %vm441_vm2, %v488_v28, %v490_v44  ;;  %v5409_v19 = vsel %vm1097_vm4, %v1109_v0, %v1111_v5  ;;  %v1118_v0 = vrot.slane %v5167_v4, 2 }
  0x43   : > { %6580 = vst [vmem:[#allocation28_spill] sm:$0xff] %v5406_v33  ;;  %6581 = vst [vmem:[#allocation29_spill] sm:$0xff] %v5409_v19  ;;  %v5434_v44 = vsel %vm265_vm1, %v300_v27, %v357_v34  ;;  %v358_v5 = vrot.slane %v194_v8, 5  ;;  %v197_v34 = vld [vmem:[%s5059_s9 + $0xe0] sm:$0xff] }
  0x44   : > { %4107 = vmatmul.mubr.msk.f32.gmra.mrb[16].mxu1 %vm519_vm3, %v5312_v7  ;;  %4333 = vmatmul.mubr.msk.f32.vlgmr.msra.gmra.mrb[0].mxu0 %vm519_vm3, %v5327_v12  ;;  %v5389_v7 = vsel %vm441_vm2, %v487_v32, %v488_v28  ;;  %v1116_v32 = vrot.slane %v5161_v2, 2  ;;  %v498_v28 = vrot.slane %v5395_v10, 1  ;;  %v500_v8 = vrot.slane %v5434_v44, 1 }
  0x45   : > { %4381 = vmatpush3.msk.msra.mxu0 %vm580_vm0, %v5122_v49  ;;  %4109 = vmatprep.mubr.msk.f32.mxu1 %vm519_vm3, %v5353_v36  ;;  %6579 = vst [vmem:[#allocation27_spill] sm:$0xff] %v5389_v7  ;;  %v5401_v49 = vsel %vm265_vm1, %v228_v42, %v299_v47  ;;  %v302_v36 = vrot.slane %v193_v60, 7  ;;  %v196_v47 = vld [vmem:[%s5059_s9 + $0xd8] sm:$0xff]  ;;  %v5422_v60 = vsel %vm441_vm2, %v492_v46, %v493_v30  ;;  %v495_v42 = vrot.slane %v5392_v16, 1 }
  0x46   : > { %4335 = vmatprep.mubr.msk.f32.mxu0 %vm519_vm3, %v5356_v62  ;;  %4430 = vmatprep.subr.msk.mxu0 %vm580_vm0, %v5364_v15  ;;  %6583 = vst [vmem:[#allocation31_spill] sm:$0xff] %v5422_v60  ;;  %v497_v2 = vrot.slane %v5401_v49, 1  ;;  %v306_v12 = vrot.slane %v196_v47, 7  ;;  %v309_v62 = vrot.slane %v198_v51, 7 }
  0x47   : > { %v5437_v46 = vsel %vm265_vm1, %v302_v36, %v303_v40  ;;  %v5450_v27 = vsel %vm441_vm2, %v493_v30, %v495_v42  ;;  %v1124_v30 = vrot.slane %v5192_v20, 2  ;;  %v5471_v42 = vsel %vm1097_vm4, %v1118_v0, %v1119_v6 }
  0x48   : > { %4110 = vmatmul.mubr.msk.f32.gmra.mrb[18].mxu1 %vm519_vm3, %v5377_v25  ;;  %4336 = vmatmul.mubr.msk.f32.gmra.mrb[2].mxu0 %vm519_vm3, %v5359_v63  ;;  %v5440_v25 = vsel %vm265_vm1, %v229_v59, %v302_v36  ;;  %6584 = vst [vmem:[#allocation32_spill] sm:$0xff] %v5450_v27  ;;  %v1121_v59 = vrot.slane %v5181_v11, 2  ;;  %v1123_v36 = vrot.slane %v5195_v21, 2  ;;  %v5468_v11 = vsel %vm441_vm2, %v497_v2, %v498_v28 }
  0x49   : > { %4112 = vmatprep.mubr.msk.f32.mxu1 %vm519_vm3, %v5389_v7  ;;  %4338 = vmatprep.mubr.msk.f32.mxu0 %vm519_vm3, %v5380_v26  ;;  %v305_v7 = vrot.slane %v195_v31, 7  ;;  %v5443_v26 = vsel %vm1097_vm4, %v1114_v22, %v1116_v32  ;;  %v502_v31 = vrot.slane %v5440_v25, 1  ;;  %v503_v22 = vrot.slane %v5437_v46, 1  ;;  %6585 = vst [vmem:[#allocation33_spill] sm:$0xff] %v5468_v11 }
  0x4a   : > { %v5465_v32 = vsel %vm265_vm1, %v303_v40, %v358_v5  ;;  %v308_v63 = vrot.slane %v197_v34, 7  ;;  %v5484_v40 = vsel %vm441_vm2, %v498_v28, %v500_v8  ;;  %v5487_v0 = vsel %vm1097_vm4, %v1119_v6, %v1121_v59 }
  0x4b   : > { %6587 = vst [vmem:[#allocation35_spill] sm:$0xff] %v5484_v40  ;;  %v5499_v2 = vsel %vm1097_vm4, %v1123_v36, %v1124_v30  ;;  %v1128_v28 = vrot.slane %v5213_v38, 2  ;;  %v1129_v6 = vrot.slane %v5220_v43, 2  ;;  %v360_v59 = vrot.slane %v198_v51, 5 }
  0x4c   : > { %4113 = vmatmul.mubr.msk.f32.gmra.mrb[20].mxu1 %vm519_vm3, %v5406_v33  ;;  %4339 = vmatmul.mubr.msk.f32.gmra.mrb[4].mxu0 %vm519_vm3, %v5409_v19  ;;  %v359_v33 = vrot.slane %v196_v47, 5  ;;  %v231_v19 = vrot.slane %v197_v34, 1  ;;  %v505_v47 = vrot.slane %v5465_v32, 1  ;;  %v5509_v34 = vsel %vm265_vm1, %v308_v63, %v309_v62 }
  0x4d   : > { %4115 = vmatprep.mubr.msk.f32.mxu1 %vm519_vm3, %v5422_v60  ;;  %4341 = vmatprep.mubr.msk.f32.mxu0 %vm519_vm3, %v5412_v39  ;;  %v5474_v60 = vsel %vm265_vm1, %v305_v7, %v306_v12  ;;  %v5477_v39 = vsel %vm265_vm1, %v230_v1, %v305_v7  ;;  %v1126_v1 = vrot.slane %v5210_v35, 2  ;;  %v5496_v7 = vsel %vm441_vm2, %v502_v31, %v503_v22 }
  0x4e   : > { %6586 = vst [vmem:[#allocation34_spill] sm:$0xff] %v5474_v60  ;;  %6588 = vst [vmem:[#allocation36_spill] sm:$0xff] %v5496_v7  ;;  %v507_v5 = vrot.slane %v5477_v39, 1  ;;  %v508_v35 = vrot.slane %v5474_v60, 1  ;;  %v5506_v8 = vsel %vm265_vm1, %v306_v12, %v359_v33  ;;  %v5512_v31 = vsel %vm265_vm1, %v231_v19, %v308_v63 }
  0x4f   : > { %6589 = vst [vmem:[#allocation37_spill] sm:$0xff] %v5509_v34  ;;  %6590 = vst [vmem:[#allocation38_spill] sm:$0xff] %v5512_v31  ;;  %v5519_v36 = vsel %vm441_vm2, %v503_v22, %v505_v47  ;;  %v5522_v12 = vsel %vm1097_vm4, %v1124_v30, %v1126_v1  ;;  %v1131_v51 = vrot.slane %v5236_v54, 2  ;;  %v5530_v63 = vsel %vm1097_vm4, %v1128_v28, %v1129_v6 }
  0x50   : > { %4116 = vmatmul.mubr.msk.f32.gmra.mrb[22].mxu1 %vm519_vm3, %v5450_v27  ;;  %4342 = vmatmul.mubr.msk.f32.gmra.mrb[6].mxu0 %vm519_vm3, %v5443_v26  ;;  %6591 = vst [vmem:[#allocation39_spill] sm:$0xff] %v5519_v36  ;;  %6592 = vst [vmem:[#allocation40_spill] sm:$0xff] %v5522_v12  ;;  %v510_v33 = vrot.slane %v5506_v8, 1  ;;  %v1133_v19 = vrot.slane %v5239_v57, 2  ;;  %v1134_v22 = vrot.slane %v5242_v61, 2  ;;  %v5536_v30 = vsel %vm441_vm2, %v507_v5, %v508_v35 }
  0x51   : > { %4118 = vmatprep.mubr.msk.f32.mxu1 %vm519_vm3, %v5468_v11  ;;  %4344 = vmatprep.mubr.msk.f32.mxu0 %vm519_vm3, %v5471_v42  ;;  %6593 = vst [vmem:[#allocation41_spill] sm:$0xff] %v5530_v63  ;;  %6594 = vst [vmem:[#allocation42_spill] sm:$0xff] %v5536_v30  ;;  %v512_v54 = vrot.slane %v5512_v31, 1  ;;  %v513_v47 = vrot.slane %v5509_v34, 1  ;;  %v5541_v1 = vsel %vm265_vm1, %v309_v62, %v360_v59  ;;  %v1136_v28 = vrot.slane %v5266_v13, 2 }
  0x52   : > { %v5555_v5 = vsel %vm441_vm2, %v508_v35, %v510_v33  ;;  %v5558_v62 = vsel %vm1097_vm4, %v1129_v6, %v1131_v51  ;;  %v5561_v59 = vsel %vm1097_vm4, %v1133_v19, %v1134_v22  ;;  %v1138_v11 = vrot.slane %v5295_v58, 2 }
  0x53   : > { %v5565_v13 = vsel %vm441_vm2, %v512_v54, %v513_v47  ;;  %v5574_v6 = vsel %vm1097_vm4, %v1134_v22, %v1136_v28  ;;  %v1143_v54 = vrot.slane %v5305_v29, 2  ;;  %v1144_v28 = vrot.slane %v5316_v9, 2 }
  0x54   : > { %4119 = vmatmul.mubr.msk.f32.gmra.mrb[24].mxu1 %vm519_vm3, %v5484_v40  ;;  %4345 = vmatmul.mubr.msk.f32.gmra.mrb[8].mxu0 %vm519_vm3, %v5487_v0  ;;  %v200_v40 = vld [vmem:[%s5059_s9 + $0xf8] sm:$0xff]  ;;  %6595 = vst [vmem:[#allocation43_spill] sm:$0xff] %v5565_v13 }
  0x55   : > { %4121 = vmatprep.mubr.msk.f32.mxu1 %vm519_vm3, %v5496_v7  ;;  %4347 = vmatprep.mubr.msk.f32.mxu0 %vm519_vm3, %v5499_v2  ;;  %v199_v7 = vld [vmem:[%s5059_s9 + $0xf0] sm:$0xff]  ;;  %v361_v35 = vrot.slane %v200_v40, 5  ;;  %s3782_s9 = sshll.u32 %s5002_s16, 12  ;;  %s6444_s16 = scalar_lea.sflag [#allocation3], %s161_s6 }
  0x56   : > { %v232_v27 = vrot.slane %v199_v7, 1  ;;  %s6432_s19 = scalar_lea.hbm %s6488_s3, %s3782_s9 }
  0x58   : > { %4122 = vmatmul.mubr.msk.f32.gmra.mrb[26].mxu1 %vm519_vm3, %v5519_v36  ;;  %4348 = vmatmul.mubr.msk.f32.gmra.mrb[10].mxu0 %vm519_vm3, %v5522_v12  ;;  %v515_v36 = vrot.slane %v5541_v1, 1  ;;  %v312_v12 = vrot.slane %v200_v40, 7 }
  0x59   : > { %4124 = vmatprep.mubr.msk.f32.mxu1 %vm519_vm3, %v5536_v30  ;;  %4350 = vmatprep.mubr.msk.f32.mxu0 %vm519_vm3, %v5530_v63  ;;  %v1139_v30 = vrot.slane %v5292_v52, 2  ;;  %v311_v63 = vrot.slane %v199_v7, 7  ;;  %v1141_v7 = vrot.slane %v5298_v53, 2 }
  0x5a   : > { %v5581_v51 = vsel %vm441_vm2, %v513_v47, %v515_v36  ;;  %v5594_v40 = vsel %vm265_vm1, %v312_v12, %v361_v35  ;;  %v1149_v36 = vrot.slane %v5349_v41, 2  ;;  %v1153_v35 = vrot.slane %v5401_v49, 2 }
  0x5b   : > { %6596 = vst [vmem:[#allocation44_spill] sm:$0xff] %v5581_v51  ;;  %v5585_v33 = vsel %vm265_vm1, %v311_v63, %v312_v12  ;;  %v5588_v19 = vsel %vm265_vm1, %v232_v27, %v311_v63  ;;  %v5591_v22 = vsel %vm1097_vm4, %v1138_v11, %v1139_v30  ;;  %v5607_v53 = vsel %vm1097_vm4, %v1139_v30, %v1141_v7  ;;  %v5618_v63 = vld [vmem:[%s6486_s1 + $0xc] sm:$0xf] }
  0x5c   : > { %4125 = vmatmul.mubr.msk.f32.gmra.mrb[28].mxu1 %vm519_vm3, %v5555_v5  ;;  %4351 = vmatmul.mubr.msk.f32.gmra.mrb[12].mxu0 %vm519_vm3, %v5558_v62  ;;  %v1146_v27 = vrot.slane %v5339_v48, 2  ;;  %v1148_v11 = vrot.slane %v5342_v14, 2  ;;  %v5613_v12 = vsel %vm1097_vm4, %v1143_v54, %v1144_v28  ;;  %v1151_v30 = vrot.slane %v5392_v16, 2 }
  0x5d   : > { %4127 = vmatprep.mubr.msk.f32.mxu1 %vm519_vm3, %v5565_v13  ;;  %4353 = vmatprep.mubr.msk.f32.mxu0 %vm519_vm3, %v5561_v59  ;;  %v1154_v7 = vrot.slane %v5395_v10, 2  ;;  %v1156_v16 = vrot.slane %v5434_v44, 2  ;;  %v2035_v13 = vrot.slane %v5585_v33, 2 }
  0x5e   : > { %v5629_v48 = vsel %vm1097_vm4, %v1144_v28, %v1146_v27  ;;  %v5635_v47 = vsel %vm1097_vm4, %v1148_v11, %v1149_v36  ;;  %v1158_v28 = vrot.slane %v5440_v25, 2  ;;  %v1159_v27 = vrot.slane %v5437_v46, 2 }
  0x5f   : > { %v5654_v54 = vsel %vm1097_vm4, %v1153_v35, %v1154_v7  ;;  %v5667_v44 = vsel %vm1097_vm4, %v1154_v7, %v1156_v16  ;;  %v1161_v11 = vrot.slane %v5465_v32, 2  ;;  %v1164_v35 = vrot.slane %v5474_v60, 2 }
  0x60   : > { %4128 = vmatmul.mubr.msk.f32.gmra.mrb[30].mxu1 %vm519_vm3, %v5581_v51  ;;  %4354 = vmatmul.mubr.msk.f32.gmra.mrb[14].mxu0 %vm519_vm3, %v5574_v6  ;;  %v1166_v7 = vrot.slane %v5506_v8, 2  ;;  %v1169_v51 = vrot.slane %v5509_v34, 2 }
  0x61   : > { %4132 = vmatprep.mubr.msk.f32.mxu1 %vm519_vm3, %v5070_v18  ;;  %4356 = vmatprep.mubr.msk.f32.mxu0 %vm519_vm3, %v5591_v22  ;;  %v5684_v32 = vsel %vm1097_vm4, %v1159_v27, %v1161_v11 }
  0x62   : > { %v5701_v8 = vsel %vm1097_vm4, %v1164_v35, %v1166_v7 }
  0x64   : > { %4133 = vmatmul.mubr.msk.f32.vlgmr.msra.gmra.mrb[0].mxu1 %vm519_vm3, %v5067_v17  ;;  %4357 = vmatmul.mubr.msk.f32.gmra.mrb[16].mxu0 %vm519_vm3, %v5607_v53 }
  0x65   : > { %4181 = vmatpush3.msk.msra.mxu1 %vm580_vm0, %v5127_v50  ;;  %4135 = vmatprep.mubr.msk.f32.mxu1 %vm519_vm3, %v5078_v24  ;;  %v5650_v50 = vsel %vm1097_vm4, %v1149_v36, %v1151_v30  ;;  %v5671_v36 = vsel %vm1097_vm4, %v1158_v28, %v1159_v27  ;;  %v1163_v30 = vrot.slane %v5477_v39, 2  ;;  %v1168_v28 = vrot.slane %v5512_v31, 2 }
  0x66   : > { %4359 = vmatprep.mubr.msk.f32.mxu0 %vm519_vm3, %v5613_v12  ;;  %4230 = vmatprep.subr.msk.mxu1 %vm580_vm0, %v5618_v63  ;;  %v1171_v27 = vrot.slane %v5541_v1, 2 }
  0x67   : > { %v5688_v16 = vsel %vm1097_vm4, %v1163_v30, %v1164_v35  ;;  %v5705_v11 = vsel %vm1097_vm4, %v1168_v28, %v1169_v51  ;;  %v2034_v30 = vrot.slane %v5588_v19, 2  ;;  %v2037_v35 = vrot.slane %v5594_v40, 2  ;;  %v5746_v28 = vld [vmem:[%s6486_s1 + $0x20] sm:$0xf] }
  0x68   : > { %4136 = vmatmul.mubr.msk.f32.gmra.mrb[2].mxu1 %vm519_vm3, %v5075_v23  ;;  %4360 = vmatmul.mubr.msk.f32.gmra.mrb[18].mxu0 %vm519_vm3, %v5629_v48  ;;  %6597 = vst [vmem:[#allocation45_spill] sm:$0xff] %v5705_v11  ;;  %v5718_v1 = vsel %vm1097_vm4, %v1169_v51, %v1171_v27  ;;  %v6603_v27 = vld [vmem:[#allocation19_spill] sm:$0xff] }
  0x69   : > { %4138 = vmatprep.mubr.msk.f32.mxu1 %vm519_vm3, %v5070_v18  ;;  %4362 = vmatprep.mubr.msk.f32.mxu0 %vm519_vm3, %v5635_v47  ;;  %6598 = vst [vmem:[#allocation46_spill] sm:$0xff] %v5718_v1  ;;  %v5722_v7 = vsel %vm1097_vm4, %v2034_v30, %v2035_v13  ;;  %v5733_v51 = vsel %vm1097_vm4, %v2035_v13, %v2037_v35  ;;  %v6602_v13 = vld [vmem:[#allocation24_spill] sm:$0xff]  ;;  %v6604_v30 = vld [vmem:[#allocation5_spill] sm:$0xff] }
  0x6a   : > { %6599 = vst [vmem:[#allocation47_spill] sm:$0xff] %v5722_v7  ;;  %6600 = vst [vmem:[#allocation48_spill] sm:$0xff] %v5733_v51  ;;  %v6605_v35 = vld [vmem:[#allocation21_spill] sm:$0xff] }
  0x6c   : > { %4139 = vmatmul.mubr.msk.f32.gmra.mrb[4].mxu1 %vm519_vm3, %v5067_v17  ;;  %4363 = vmatmul.mubr.msk.f32.gmra.mrb[20].mxu0 %vm519_vm3, %v5650_v50 }
  0x6d   : > { %4141 = vmatprep.mubr.msk.f32.mxu1 %vm519_vm3, %v5100_v37  ;;  %4365 = vmatprep.mubr.msk.f32.mxu0 %vm519_vm3, %v5654_v54 }
  0x70   : > { %4142 = vmatmul.mubr.msk.f32.gmra.mrb[6].mxu1 %vm519_vm3, %v5114_v45  ;;  %4366 = vmatmul.mubr.msk.f32.gmra.mrb[22].mxu0 %vm519_vm3, %v5667_v44 }
  0x71   : > { %4144 = vmatprep.mubr.msk.f32.mxu1 %vm519_vm3, %v5141_v56  ;;  %4368 = vmatprep.mubr.msk.f32.mxu0 %vm519_vm3, %v5671_v36 }
  0x74   : > { %4145 = vmatmul.mubr.msk.f32.gmra.mrb[8].mxu1 %vm519_vm3, %v5138_v55  ;;  %4369 = vmatmul.mubr.msk.f32.gmra.mrb[24].mxu0 %vm519_vm3, %v5684_v32 }
  0x75   : > { %4147 = vmatprep.mubr.msk.f32.mxu1 %vm519_vm3, %v5167_v4  ;;  %4371 = vmatprep.mubr.msk.f32.mxu0 %vm519_vm3, %v5688_v16 }
  0x78   : > { %4148 = vmatmul.mubr.msk.f32.gmra.mrb[10].mxu1 %vm519_vm3, %v5164_v3  ;;  %4372 = vmatmul.mubr.msk.f32.gmra.mrb[26].mxu0 %vm519_vm3, %v5701_v8 }
  0x79   : > { %4150 = vmatprep.mubr.msk.f32.mxu1 %vm519_vm3, %v5195_v21  ;;  %4374 = vmatprep.mubr.msk.f32.mxu0 %vm519_vm3, %v5705_v11 }
  0x7c   : > { %4151 = vmatmul.mubr.msk.f32.gmra.mrb[12].mxu1 %vm519_vm3, %v5192_v20  ;;  %4375 = vmatmul.mubr.msk.f32.gmra.mrb[28].mxu0 %vm519_vm3, %v5718_v1 }
  0x7d   : > { %4153 = vmatprep.mubr.msk.f32.mxu1 %vm519_vm3, %v5213_v38  ;;  %4377 = vmatprep.mubr.msk.f32.mxu0 %vm519_vm3, %v5722_v7  ;;  %v6611_v7 = vld [vmem:[#allocation6_spill] sm:$0xff] }
  0x80   : > { %4154 = vmatmul.mubr.msk.f32.gmra.mrb[14].mxu1 %vm519_vm3, %v5220_v43  ;;  %4378 = vmatmul.mubr.msk.f32.gmra.mrb[30].mxu0 %vm519_vm3, %v5733_v51  ;;  %v6610_v51 = vld [vmem:[#allocation41_spill] sm:$0xff] }
  0x81   : > { %4156 = vmatprep.mubr.msk.f32.mxu1 %vm519_vm3, %v5239_v57  ;;  %4382 = vmatprep.mubr.msk.f32.mxu0 %vm519_vm3, %v5070_v18 }
  0x84   : > { %4157 = vmatmul.mubr.msk.f32.gmra.mrb[16].mxu1 %vm519_vm3, %v5242_v61  ;;  %4383 = vmatmul.mubr.msk.f32.vlgmr.msra.gmra.mrb[0].mxu0 %vm519_vm3, %v5067_v17 }
  0x85   : > { %4431 = vmatpush3.msk.msra.mxu0 %vm580_vm0, %v5364_v15  ;;  %4159 = vmatprep.mubr.msk.f32.mxu1 %vm519_vm3, %v5295_v58  ;;  %v6601_v15 = vld [vmem:[#allocation23_spill] sm:$0xff] }
  0x86   : > { %4385 = vmatprep.mubr.msk.f32.mxu0 %vm519_vm3, %v5100_v37  ;;  %4480 = vmatprep.subr.msk.mxu0 %vm580_vm0, %v5746_v28 }
  0x88   : > { %4160 = vmatmul.mubr.msk.f32.gmra.mrb[18].mxu1 %vm519_vm3, %v5292_v52  ;;  %4386 = vmatmul.mubr.msk.f32.gmra.mrb[2].mxu0 %vm519_vm3, %v5114_v45 }
  0x89   : > { %4162 = vmatprep.mubr.msk.f32.mxu1 %vm519_vm3, %v5305_v29  ;;  %4388 = vmatprep.mubr.msk.f32.mxu0 %vm519_vm3, %v5141_v56 }
  0x8c   : > { %4163 = vmatmul.mubr.msk.f32.gmra.mrb[20].mxu1 %vm519_vm3, %v5316_v9  ;;  %4389 = vmatmul.mubr.msk.f32.gmra.mrb[4].mxu0 %vm519_vm3, %v5138_v55 }
  0x8d   : > { %4165 = vmatprep.mubr.msk.f32.mxu1 %vm519_vm3, %v5342_v14  ;;  %4391 = vmatprep.mubr.msk.f32.mxu0 %vm519_vm3, %v5167_v4 }
  0x90   : > { %4166 = vmatmul.mubr.msk.f32.gmra.mrb[22].mxu1 %vm519_vm3, %v5349_v41  ;;  %4392 = vmatmul.mubr.msk.f32.gmra.mrb[6].mxu0 %vm519_vm3, %v5164_v3 }
  0x91   : > { %4168 = vmatprep.mubr.msk.f32.mxu1 %vm519_vm3, %v5401_v49  ;;  %4394 = vmatprep.mubr.msk.f32.mxu0 %vm519_vm3, %v5195_v21 }
  0x94   : > { %4169 = vmatmul.mubr.msk.f32.gmra.mrb[24].mxu1 %vm519_vm3, %v5395_v10  ;;  %4395 = vmatmul.mubr.msk.f32.gmra.mrb[8].mxu0 %vm519_vm3, %v5192_v20 }
  0x95   : > { %4171 = vmatprep.mubr.msk.f32.mxu1 %vm519_vm3, %v5440_v25  ;;  %4397 = vmatprep.mubr.msk.f32.mxu0 %vm519_vm3, %v5213_v38 }
  0x98   : > { %4172 = vmatmul.mubr.msk.f32.gmra.mrb[26].mxu1 %vm519_vm3, %v5437_v46  ;;  %4398 = vmatmul.mubr.msk.f32.gmra.mrb[10].mxu0 %vm519_vm3, %v5220_v43 }
  0x99   : > { %4174 = vmatprep.mubr.msk.f32.mxu1 %vm519_vm3, %v5477_v39  ;;  %4400 = vmatprep.mubr.msk.f32.mxu0 %vm519_vm3, %v5239_v57 }
  0x9c   : > { %4175 = vmatmul.mubr.msk.f32.gmra.mrb[28].mxu1 %vm519_vm3, %v5474_v60  ;;  %4401 = vmatmul.mubr.msk.f32.gmra.mrb[12].mxu0 %vm519_vm3, %v5242_v61 }
  0x9d   : > { %4177 = vmatprep.mubr.msk.f32.mxu1 %vm519_vm3, %v5512_v31  ;;  %4403 = vmatprep.mubr.msk.f32.mxu0 %vm519_vm3, %v5295_v58 }
  0xa0   : > { %4178 = vmatmul.mubr.msk.f32.gmra.mrb[30].mxu1 %vm519_vm3, %v5509_v34  ;;  %4404 = vmatmul.mubr.msk.f32.gmra.mrb[14].mxu0 %vm519_vm3, %v5292_v52 }
  0xa1   : > { %4182 = vmatprep.mubr.msk.f32.mxu1 %vm519_vm3, %v6601_v15  ;;  %4406 = vmatprep.mubr.msk.f32.mxu0 %vm519_vm3, %v5305_v29 }
  0xa4   : > { %4183 = vmatmul.mubr.msk.f32.vlgmr.msra.gmra.mrb[0].mxu1 %vm519_vm3, %v6602_v13  ;;  %4407 = vmatmul.mubr.msk.f32.gmra.mrb[16].mxu0 %vm519_vm3, %v5316_v9 }
  0xa5   : > { %4231 = vmatpush3.msk.msra.mxu1 %vm580_vm0, %v5618_v63  ;;  %4185 = vmatprep.mubr.msk.f32.mxu1 %vm519_vm3, %v6603_v27  ;;  %v6606_v63 = vld [vmem:[#allocation26_spill] sm:$0xff]  ;;  %v6607_v27 = vld [vmem:[#allocation29_spill] sm:$0xff] }
  0xa6   : > { %4409 = vmatprep.mubr.msk.f32.mxu0 %vm519_vm3, %v5342_v14  ;;  %4530 = vmatprep.subr.msk.mxu1 %vm580_vm0, %v6604_v30  ;;  %v6608_v30 = vld [vmem:[#allocation30_spill] sm:$0xff] }
  0xa8   : > { %4186 = vmatmul.mubr.msk.f32.gmra.mrb[2].mxu1 %vm519_vm3, %v6605_v35  ;;  %4410 = vmatmul.mubr.msk.f32.gmra.mrb[18].mxu0 %vm519_vm3, %v5349_v41  ;;  %v6609_v35 = vld [vmem:[#allocation40_spill] sm:$0xff] }
  0xa9   : > { %4188 = vmatprep.mubr.msk.f32.mxu1 %vm519_vm3, %v6601_v15  ;;  %4412 = vmatprep.mubr.msk.f32.mxu0 %vm519_vm3, %v5401_v49 }
  0xac   : > { %4189 = vmatmul.mubr.msk.f32.gmra.mrb[4].mxu1 %vm519_vm3, %v6602_v13  ;;  %4413 = vmatmul.mubr.msk.f32.gmra.mrb[20].mxu0 %vm519_vm3, %v5395_v10 }
  0xad   : > { %4191 = vmatprep.mubr.msk.f32.mxu1 %vm519_vm3, %v6606_v63  ;;  %4415 = vmatprep.mubr.msk.f32.mxu0 %vm519_vm3, %v5440_v25 }
  0xb0   : > { %4192 = vmatmul.mubr.msk.f32.gmra.mrb[6].mxu1 %vm519_vm3, %v6607_v27  ;;  %4416 = vmatmul.mubr.msk.f32.gmra.mrb[22].mxu0 %vm519_vm3, %v5437_v46 }
  0xb1   : > { %4194 = vmatprep.mubr.msk.f32.mxu1 %vm519_vm3, %v6608_v30  ;;  %4418 = vmatprep.mubr.msk.f32.mxu0 %vm519_vm3, %v5477_v39 }
  0xb4   : > { %4195 = vmatmul.mubr.msk.f32.gmra.mrb[8].mxu1 %vm519_vm3, %v5443_v26  ;;  %4419 = vmatmul.mubr.msk.f32.gmra.mrb[24].mxu0 %vm519_vm3, %v5474_v60  ;;  %v6612_v60 = vld [vmem:[#allocation7_spill] sm:$0xff] }
  0xb5   : > { %4197 = vmatprep.mubr.msk.f32.mxu1 %vm519_vm3, %v5471_v42  ;;  %4421 = vmatprep.mubr.msk.f32.mxu0 %vm519_vm3, %v5512_v31 }
  0xb8   : > { %4198 = vmatmul.mubr.msk.f32.gmra.mrb[10].mxu1 %vm519_vm3, %v5487_v0  ;;  %4422 = vmatmul.mubr.msk.f32.gmra.mrb[26].mxu0 %vm519_vm3, %v5509_v34 }
  0xb9   : > { %4200 = vmatprep.mubr.msk.f32.mxu1 %vm519_vm3, %v5499_v2  ;;  %4424 = vmatprep.mubr.msk.f32.mxu0 %vm519_vm3, %v5588_v19 }
  0xbc   : > { %4201 = vmatmul.mubr.msk.f32.gmra.mrb[12].mxu1 %vm519_vm3, %v6609_v35  ;;  %4425 = vmatmul.mubr.msk.f32.gmra.mrb[28].mxu0 %vm519_vm3, %v5585_v33 }
  0xbd   : > { %4203 = vmatprep.mubr.msk.f32.mxu1 %vm519_vm3, %v6610_v51  ;;  %4427 = vmatprep.mubr.msk.f32.mxu0 %vm519_vm3, %v5512_v31  ;;  %v6613_v31 = vld [vmem:[#allocation8_spill] sm:$0xff] }
  0xc0   : > { %4204 = vmatmul.mubr.msk.f32.gmra.mrb[14].mxu1 %vm519_vm3, %v5558_v62  ;;  %4428 = vmatmul.mubr.msk.f32.gmra.mrb[30].mxu0 %vm519_vm3, %v5509_v34  ;;  %v6614_v34 = vld [vmem:[#allocation9_spill] sm:$0xff] }
  0xc1   : > { %4206 = vmatprep.mubr.msk.f32.mxu1 %vm519_vm3, %v5561_v59  ;;  %4432 = vmatprep.mubr.msk.f32.mxu0 %vm519_vm3, %v6611_v7  ;;  %v6615_v7 = vld [vmem:[#allocation10_spill] sm:$0xff] }
  0xc4   : > { %4207 = vmatmul.mubr.msk.f32.gmra.mrb[16].mxu1 %vm519_vm3, %v5574_v6  ;;  %4433 = vmatmul.mubr.msk.f32.vlgmr.msra.gmra.mrb[0].mxu0 %vm519_vm3, %v6612_v60  ;;  %v6616_v60 = vld [vmem:[#allocation11_spill] sm:$0xff] }
  0xc5   : > { %4481 = vmatpush3.msk.msra.mxu0 %vm580_vm0, %v5746_v28  ;;  %4209 = vmatprep.mubr.msk.f32.mxu1 %vm519_vm3, %v5591_v22  ;;  %v6619_v28 = vld [vmem:[#allocation14_spill] sm:$0xff] }
  0xc6   : > { %4435 = vmatprep.mubr.msk.f32.mxu0 %vm519_vm3, %v6613_v31  ;;  %v6617_v31 = vld [vmem:[#allocation12_spill] sm:$0xff] }
  0xc8   : > { %4210 = vmatmul.mubr.msk.f32.gmra.mrb[18].mxu1 %vm519_vm3, %v5607_v53  ;;  %4436 = vmatmul.mubr.msk.f32.gmra.mrb[2].mxu0 %vm519_vm3, %v6614_v34  ;;  %v6618_v34 = vld [vmem:[#allocation13_spill] sm:$0xff] }
  0xc9   : > { %4212 = vmatprep.mubr.msk.f32.mxu1 %vm519_vm3, %v5613_v12  ;;  %4438 = vmatprep.mubr.msk.f32.mxu0 %vm519_vm3, %v6615_v7  ;;  %v6620_v7 = vld [vmem:[#allocation15_spill] sm:$0xff] }
  0xcc   : > { %4213 = vmatmul.mubr.msk.f32.gmra.mrb[20].mxu1 %vm519_vm3, %v5629_v48  ;;  %4439 = vmatmul.mubr.msk.f32.gmra.mrb[4].mxu0 %vm519_vm3, %v6616_v60  ;;  %v6621_v60 = vld [vmem:[#allocation16_spill] sm:$0xff] }
  0xcd   : > { %4215 = vmatprep.mubr.msk.f32.mxu1 %vm519_vm3, %v5635_v47  ;;  %4441 = vmatprep.mubr.msk.f32.mxu0 %vm519_vm3, %v6617_v31  ;;  %v6622_v31 = vld [vmem:[#allocation17_spill] sm:$0xff] }
  0xd0   : > { %4216 = vmatmul.mubr.msk.f32.gmra.mrb[22].mxu1 %vm519_vm3, %v5650_v50  ;;  %4442 = vmatmul.mubr.msk.f32.gmra.mrb[6].mxu0 %vm519_vm3, %v6618_v34  ;;  %v6623_v34 = vld [vmem:[#allocation18_spill] sm:$0xff] }
  0xd1   : > { %4218 = vmatprep.mubr.msk.f32.mxu1 %vm519_vm3, %v5654_v54  ;;  %4444 = vmatprep.mubr.msk.f32.mxu0 %vm519_vm3, %v6619_v28  ;;  %v6624_v28 = vld [vmem:[#allocation20_spill] sm:$0xff] }
  0xd4   : > { %4219 = vmatmul.mubr.msk.f32.gmra.mrb[24].mxu1 %vm519_vm3, %v5667_v44  ;;  %4445 = vmatmul.mubr.msk.f32.gmra.mrb[8].mxu0 %vm519_vm3, %v6620_v7  ;;  %v6625_v7 = vld [vmem:[#allocation22_spill] sm:$0xff] }
  0xd5   : > { %4221 = vmatprep.mubr.msk.f32.mxu1 %vm519_vm3, %v5671_v36  ;;  %4447 = vmatprep.mubr.msk.f32.mxu0 %vm519_vm3, %v6621_v60  ;;  %v6626_v60 = vld [vmem:[#allocation25_spill] sm:$0xff] }
  0xd8   : > { %4222 = vmatmul.mubr.msk.f32.gmra.mrb[26].mxu1 %vm519_vm3, %v5684_v32  ;;  %4448 = vmatmul.mubr.msk.f32.gmra.mrb[10].mxu0 %vm519_vm3, %v6622_v31  ;;  %v6627_v31 = vld [vmem:[#allocation27_spill] sm:$0xff] }
  0xd9   : > { %4224 = vmatprep.mubr.msk.f32.mxu1 %vm519_vm3, %v5688_v16  ;;  %4450 = vmatprep.mubr.msk.f32.mxu0 %vm519_vm3, %v6623_v34  ;;  %v6628_v34 = vld [vmem:[#allocation28_spill] sm:$0xff] }
  0xdc   : > { %4225 = vmatmul.mubr.msk.f32.gmra.mrb[28].mxu1 %vm519_vm3, %v5701_v8  ;;  %4451 = vmatmul.mubr.msk.f32.gmra.mrb[12].mxu0 %vm519_vm3, %v6624_v28  ;;  %v4893_v28 = vld [vmem:[%s6486_s1 + $0x10] sm:$0xf] }
  0xdd   : > { %4227 = vmatprep.mubr.msk.f32.mxu1 %vm519_vm3, %v5705_v11  ;;  %4453 = vmatprep.mubr.msk.f32.mxu0 %vm519_vm3, %v6625_v7  ;;  %v1764_v11 = vrot.slane %v5585_v33, 1 }
  0xe0   : > { %4228 = vmatmul.mubr.msk.f32.gmra.mrb[30].mxu1 %vm519_vm3, %v5718_v1  ;;  %4454 = vmatmul.mubr.msk.f32.gmra.mrb[14].mxu0 %vm519_vm3, %v6626_v60  ;;  %v6629_v1 = vld [vmem:[#allocation31_spill] sm:$0xff] }
  0xe1   : > { %4232 = vmatprep.mubr.msk.f32.mxu1 %vm519_vm3, %v5078_v24  ;;  %4456 = vmatprep.mubr.msk.f32.mxu0 %vm519_vm3, %v6627_v31  ;;  %v6630_v24 = vld [vmem:[#allocation32_spill] sm:$0xff] }
  0xe4   : > { %4233 = vmatmul.mubr.msk.f32.vlgmr.msra.gmra.mrb[0].mxu1 %vm519_vm3, %v5075_v23  ;;  %4457 = vmatmul.mubr.msk.f32.gmra.mrb[16].mxu0 %vm519_vm3, %v6628_v34  ;;  %v6631_v23 = vld [vmem:[#allocation33_spill] sm:$0xff] }
  0xe5   : > { %4531 = vmatpush3.msk.msra.mxu1 %vm580_vm0, %v4893_v28  ;;  %4235 = vmatprep.mubr.msk.f32.mxu1 %vm519_vm3, %v5070_v18  ;;  %v6632_v28 = vld [vmem:[#allocation35_spill] sm:$0xff]  ;;  %v6633_v18 = vld [vmem:[#allocation36_spill] sm:$0xff] }
  0xe6   : > { %4459 = vmatprep.mubr.msk.f32.mxu0 %vm519_vm3, %v6629_v1 }
  0xe8   : > { %4236 = vmatmul.mubr.msk.f32.gmra.mrb[2].mxu1 %vm519_vm3, %v5067_v17  ;;  %4460 = vmatmul.mubr.msk.f32.gmra.mrb[18].mxu0 %vm519_vm3, %v6630_v24  ;;  %v6634_v17 = vld [vmem:[#allocation39_spill] sm:$0xff] }
  0xe9   : > { %4238 = vmatprep.mubr.msk.f32.mxu1 %vm519_vm3, %v5100_v37  ;;  %4462 = vmatprep.mubr.msk.f32.mxu0 %vm519_vm3, %v6631_v23  ;;  %v6635_v37 = vld [vmem:[#allocation42_spill] sm:$0xff] }
  0xec   : > { %4239 = vmatmul.mubr.msk.f32.gmra.mrb[4].mxu1 %vm519_vm3, %v5114_v45  ;;  %4463 = vmatmul.mubr.msk.f32.gmra.mrb[20].mxu0 %vm519_vm3, %v6632_v28  ;;  %v1763_v45 = vrot.slane %v5588_v19, 1 }
  0xed   : > { %4241 = vmatprep.mubr.msk.f32.mxu1 %vm519_vm3, %v5141_v56  ;;  %4465 = vmatprep.mubr.msk.f32.mxu0 %vm519_vm3, %v6633_v18  ;;  %v1766_v56 = vrot.slane %v5594_v40, 1 }
  0xf0   : > { %4242 = vmatmul.mubr.msk.f32.gmra.mrb[6].mxu1 %vm519_vm3, %v5138_v55  ;;  %4466 = vmatmul.mubr.msk.f32.gmra.mrb[22].mxu0 %vm519_vm3, %v6634_v17  ;;  %v6636_v55 = vld [vmem:[#allocation43_spill] sm:$0xff] }
  0xf1   : > { %4244 = vmatprep.mubr.msk.f32.mxu1 %vm519_vm3, %v5167_v4  ;;  %4468 = vmatprep.mubr.msk.f32.mxu0 %vm519_vm3, %v6635_v37  ;;  %v5998_v4 = vsel %vm441_vm2, %v1763_v45, %v1764_v11  ;;  %v6637_v37 = vld [vmem:[#allocation44_spill] sm:$0xff] }
  0xf4   : > { %4245 = vmatmul.mubr.msk.f32.gmra.mrb[8].mxu1 %vm519_vm3, %v5164_v3  ;;  %4469 = vmatmul.mubr.msk.f32.gmra.mrb[24].mxu0 %vm519_vm3, %v5555_v5  ;;  %v6009_v3 = vsel %vm441_vm2, %v1764_v11, %v1766_v56 }
  0xf5   : > { %4247 = vmatprep.mubr.msk.f32.mxu1 %vm519_vm3, %v5195_v21  ;;  %4471 = vmatprep.mubr.msk.f32.mxu0 %vm519_vm3, %v6636_v55  ;;  %v6639_v21 = vld [vmem:[#allocation38_spill] sm:$0xff] }
  0xf8   : > { %4248 = vmatmul.mubr.msk.f32.gmra.mrb[10].mxu1 %vm519_vm3, %v5192_v20  ;;  %4472 = vmatmul.mubr.msk.f32.gmra.mrb[26].mxu0 %vm519_vm3, %v6637_v37  ;;  %v6638_v20 = vld [vmem:[#allocation34_spill] sm:$0xff] }
  0xf9   : > { %4250 = vmatprep.mubr.msk.f32.mxu1 %vm519_vm3, %v5213_v38  ;;  %4474 = vmatprep.mubr.msk.f32.mxu0 %vm519_vm3, %v5998_v4  ;;  %v6640_v38 = vld [vmem:[#allocation37_spill] sm:$0xff] }
  0xfc   : > { %4251 = vmatmul.mubr.msk.f32.gmra.mrb[12].mxu1 %vm519_vm3, %v5220_v43  ;;  %4475 = vmatmul.mubr.msk.f32.gmra.mrb[28].mxu0 %vm519_vm3, %v6009_v3  ;;  %v6641_v43 = vld [vmem:[#allocation42_spill] sm:$0xff] }
  0xfd   : > { %4253 = vmatprep.mubr.msk.f32.mxu1 %vm519_vm3, %v5239_v57  ;;  %4477 = vmatprep.mubr.msk.f32.mxu0 %vm519_vm3, %v6636_v55  ;;  %v6642_v57 = vld [vmem:[#allocation45_spill] sm:$0xff] }
 0x100   : > { %4254 = vmatmul.mubr.msk.f32.gmra.mrb[14].mxu1 %vm519_vm3, %v5242_v61  ;;  %4478 = vmatmul.mubr.msk.f32.gmra.mrb[30].mxu0 %vm519_vm3, %v6637_v37  ;;  %v6643_v61 = vld [vmem:[#allocation46_spill] sm:$0xff] }
 0x101   : > { %4256 = vmatprep.mubr.msk.f32.mxu1 %vm519_vm3, %v5295_v58  ;;  %4482 = vmatprep.mubr.msk.f32.mxu0 %vm519_vm3, %v6601_v15  ;;  %v6645_v58 = vld [vmem:[#allocation48_spill] sm:$0xff] }
 0x104   : > { %4257 = vmatmul.mubr.msk.f32.gmra.mrb[16].mxu1 %vm519_vm3, %v5292_v52  ;;  %4483 = vmatmul.mubr.msk.f32.vlgmr.msra.gmra.mrb[0].mxu0 %vm519_vm3, %v6602_v13  ;;  %v6644_v52 = vld [vmem:[#allocation47_spill] sm:$0xff] }
 0x105   : > { %4259 = vmatprep.mubr.msk.f32.mxu1 %vm519_vm3, %v5305_v29  ;;  %4485 = vmatprep.mubr.msk.f32.mxu0 %vm519_vm3, %v6606_v63 }
 0x108   : > { %4260 = vmatmul.mubr.msk.f32.gmra.mrb[18].mxu1 %vm519_vm3, %v5316_v9  ;;  %4486 = vmatmul.mubr.msk.f32.gmra.mrb[2].mxu0 %vm519_vm3, %v6607_v27 }
 0x109   : > { %4262 = vmatprep.mubr.msk.f32.mxu1 %vm519_vm3, %v5342_v14  ;;  %4488 = vmatprep.mubr.msk.f32.mxu0 %vm519_vm3, %v6608_v30 }
 0x10c   : > { %4263 = vmatmul.mubr.msk.f32.gmra.mrb[20].mxu1 %vm519_vm3, %v5349_v41  ;;  %4489 = vmatmul.mubr.msk.f32.gmra.mrb[4].mxu0 %vm519_vm3, %v5443_v26 }
 0x10d   : > { %4265 = vmatprep.mubr.msk.f32.mxu1 %vm519_vm3, %v5401_v49  ;;  %4491 = vmatprep.mubr.msk.f32.mxu0 %vm519_vm3, %v5471_v42 }
 0x110   : > { %4266 = vmatmul.mubr.msk.f32.gmra.mrb[22].mxu1 %vm519_vm3, %v5395_v10  ;;  %4492 = vmatmul.mubr.msk.f32.gmra.mrb[6].mxu0 %vm519_vm3, %v5487_v0 }
 0x111   : > { %4268 = vmatprep.mubr.msk.f32.mxu1 %vm519_vm3, %v5440_v25  ;;  %4494 = vmatprep.mubr.msk.f32.mxu0 %vm519_vm3, %v5499_v2 }
 0x114   : > { %4269 = vmatmul.mubr.msk.f32.gmra.mrb[24].mxu1 %vm519_vm3, %v5437_v46  ;;  %4495 = vmatmul.mubr.msk.f32.gmra.mrb[8].mxu0 %vm519_vm3, %v6609_v35 }
 0x115   : > { %4271 = vmatprep.mubr.msk.f32.mxu1 %vm519_vm3, %v5477_v39  ;;  %4497 = vmatprep.mubr.msk.f32.mxu0 %vm519_vm3, %v6610_v51 }
 0x118   : > { %4272 = vmatmul.mubr.msk.f32.gmra.mrb[26].mxu1 %vm519_vm3, %v6638_v20  ;;  %4498 = vmatmul.mubr.msk.f32.gmra.mrb[10].mxu0 %vm519_vm3, %v5558_v62 }
 0x119   : > { %4274 = vmatprep.mubr.msk.f32.mxu1 %vm519_vm3, %v6639_v21  ;;  %4500 = vmatprep.mubr.msk.f32.mxu0 %vm519_vm3, %v5561_v59 }
 0x11c   : > { %4275 = vmatmul.mubr.msk.f32.gmra.mrb[28].mxu1 %vm519_vm3, %v6640_v38  ;;  %4501 = vmatmul.mubr.msk.f32.gmra.mrb[12].mxu0 %vm519_vm3, %v5574_v6 }
 0x11d   : > { %4277 = vmatprep.mubr.msk.f32.mxu1 %vm519_vm3, %v5588_v19  ;;  %4503 = vmatprep.mubr.msk.f32.mxu0 %vm519_vm3, %v5591_v22 }
 0x120   : > { %4278 = vmatmul.mubr.msk.f32.gmra.mrb[30].mxu1 %vm519_vm3, %v5585_v33  ;;  %4504 = vmatmul.mubr.msk.f32.gmra.mrb[14].mxu0 %vm519_vm3, %v5607_v53  ;;  %v6166_v33 = vld [vmem:[%s6487_s2] ss:$0 sm:$0xff] }
 0x121   : > { %4306 = vmatprep.mubr.msk.f32.mxu1 %vm519_vm3, %v6625_v7  ;;  %4506 = vmatprep.mubr.msk.f32.mxu0 %vm519_vm3, %v5613_v12 }
 0x124   : > { %4307 = vmatmul.mubr.msk.f32.vlgmr.msra.gmra.mrb[16].mxu1 %vm519_vm3, %v6626_v60  ;;  %4507 = vmatmul.mubr.msk.f32.gmra.mrb[16].mxu0 %vm519_vm3, %v5629_v48 }
 0x125   : > { %4309 = vmatprep.mubr.msk.f32.mxu1 %vm519_vm3, %v6627_v31  ;;  %4509 = vmatprep.mubr.msk.f32.mxu0 %vm519_vm3, %v5635_v47 }
 0x128   : > { %4310 = vmatmul.mubr.msk.f32.gmra.mrb[18].mxu1 %vm519_vm3, %v6628_v34  ;;  %4510 = vmatmul.mubr.msk.f32.gmra.mrb[18].mxu0 %vm519_vm3, %v5650_v50 }
 0x129   : > { %4312 = vmatprep.mubr.msk.f32.mxu1 %vm519_vm3, %v6629_v1  ;;  %4512 = vmatprep.mubr.msk.f32.mxu0 %vm519_vm3, %v5654_v54 }
 0x12c   : > { %4313 = vmatmul.mubr.msk.f32.gmra.mrb[20].mxu1 %vm519_vm3, %v6630_v24  ;;  %4513 = vmatmul.mubr.msk.f32.gmra.mrb[20].mxu0 %vm519_vm3, %v5667_v44 }
 0x12d   : > { %4315 = vmatprep.mubr.msk.f32.mxu1 %vm519_vm3, %v6631_v23  ;;  %4515 = vmatprep.mubr.msk.f32.mxu0 %vm519_vm3, %v5671_v36 }
 0x130   : > { %4316 = vmatmul.mubr.msk.f32.gmra.mrb[22].mxu1 %vm519_vm3, %v6632_v28  ;;  %4516 = vmatmul.mubr.msk.f32.gmra.mrb[22].mxu0 %vm519_vm3, %v5684_v32 }
 0x131   : > { %4318 = vmatprep.mubr.msk.f32.mxu1 %vm519_vm3, %v6633_v18  ;;  %4518 = vmatprep.mubr.msk.f32.mxu0 %vm519_vm3, %v5688_v16 }
 0x134   : > { %4319 = vmatmul.mubr.msk.f32.gmra.mrb[24].mxu1 %vm519_vm3, %v6634_v17  ;;  %4519 = vmatmul.mubr.msk.f32.gmra.mrb[24].mxu0 %vm519_vm3, %v5701_v8 }
 0x135   : > { %4321 = vmatprep.mubr.msk.f32.mxu1 %vm519_vm3, %v6641_v43  ;;  %4521 = vmatprep.mubr.msk.f32.mxu0 %vm519_vm3, %v6642_v57 }
 0x138   : > { %4322 = vmatmul.mubr.msk.f32.gmra.mrb[26].mxu1 %vm519_vm3, %v5555_v5  ;;  %4522 = vmatmul.mubr.msk.f32.gmra.mrb[26].mxu0 %vm519_vm3, %v6643_v61 }
 0x139   : > { %4324 = vmatprep.mubr.msk.f32.mxu1 %vm519_vm3, %v6636_v55  ;;  %4524 = vmatprep.mubr.msk.f32.mxu0 %vm519_vm3, %v6644_v52 }
 0x13c   : > { %4325 = vmatmul.mubr.msk.f32.gmra.mrb[28].mxu1 %vm519_vm3, %v6637_v37  ;;  %4525 = vmatmul.mubr.msk.f32.gmra.mrb[28].mxu0 %vm519_vm3, %v6645_v58 }
 0x13d   : > { %4327 = vmatprep.mubr.msk.f32.mxu1 %vm519_vm3, %v5998_v4  ;;  %4527 = vmatprep.mubr.msk.f32.mxu0 %vm519_vm3, %v6642_v57 }
 0x140   : > { %4328 = vmatmul.mubr.msk.f32.gmra.mrb[30].mxu1 %vm519_vm3, %v6009_v3  ;;  %4528 = vmatmul.mubr.msk.f32.gmra.mrb[30].mxu0 %vm519_vm3, %v6643_v61 }
 0x1b7   : > { %v4234_v29 = vpop.f32.mrb[0].mxu1 }
 0x1b8   : > { %v1571_v9 = vpop.f32.mrb[1].mxu1 }
 0x1bb   : > { %v4237_v14 = vpop.f32.mrb[2].mxu1 }
 0x1bc   : > { %v1581_v41 = vpop.f32.mrb[3].mxu1 }
 0x1bf   : > { %v4240_v25 = vpop.f32.mrb[4].mxu1 }
 0x1c0   : > { %v1591_v26 = vpop.f32.mrb[5].mxu1 }
 0x1c3   : > { %v4243_v10 = vpop.f32.mrb[6].mxu1 }
 0x1c4   : > { %v1601_v49 = vpop.f32.mrb[7].mxu1 }
 0x1c7   : > { %v4246_v39 = vpop.f32.mrb[8].mxu1 }
 0x1c8   : > { %v1611_v46 = vpop.f32.mrb[9].mxu1 }
 0x1cb   : > { %v6151_v42 = vpop.f32.mrb[10].mxu1 }
 0x1cc   : > { %v6153_v0 = vpop.f32.mrb[11].mxu1 }
 0x1cf   : > { %v6155_v2 = vpop.f32.mrb[12].mxu1 }
 0x1d0   : > { %v6157_v5 = vpop.f32.mrb[13].mxu1 }
 0x1d3   : > { %v6159_v62 = vpop.f32.mrb[14].mxu1 }
 0x1d4   : > { %v6161_v59 = vpop.f32.mrb[15].mxu1 }
 0x1d7   : > { %v4484_v6 = vpop.f32.mrb[0].mxu0 }
 0x1d8   : > { %v4532_v19 = vadd.f32 %v4484_v6, %v4234_v29  ;;  %v2900_v22 = vpop.f32.mrb[1].mxu0 }
 0x1d9   : > { %v4533_v40 = vadd.f32 %v2900_v22, %v1571_v9 }
 0x1da   : > { %v3099_v53 = vadd.f32 %v4532_v19, %v6166_v33 }
 0x1db   : > { %v6170_v12 = vadd.f32 %v4533_v40, %v6166_v33  ;;  %v4487_v48 = vpop.f32.mrb[2].mxu0 }
 0x1dc   : > { %v3163_v47 = vmin.f32 %v3099_v53, 0.0  ;;  %v4534_v50 = vadd.f32 %v4487_v48, %v4237_v14  ;;  %v2910_v54 = vpop.f32.mrb[3].mxu0  ;;  %vm3131_vm6 = vcmp.gt.f32.partialorder %v3099_v53, 0.0 }
 0x1dd   : > { %v3162_v44 = vmin.f32 %v6170_v12, 0.0  ;;  %v4535_v36 = vadd.f32 %v2910_v54, %v1581_v41  ;;  %vm3130_vm7 = vcmp.gt.f32.partialorder %v6170_v12, 0.0 }
 0x1de   : > { %v3196_v32 = vmul.f32 1.442695, %v3163_v47  ;;  %v6174_v16 = vadd.f32 %v4534_v50, %v6166_v33 }
 0x1df   : > { %v3194_v8 = vmul.f32 1.442695, %v3162_v44  ;;  %v6177_v11 = vadd.f32 %v4535_v36, %v6166_v33  ;;  %v4490_v1 = vpop.f32.mrb[4].mxu0 }
 0x1e0   : > { %4829 = vpow2.f32 %v3196_v32  ;;  %v3165_v51 = vmin.f32 %v6174_v16, 0.0  ;;  %v4536_v15 = vadd.f32 %v4490_v1, %v4240_v25  ;;  %v2920_v13 = vpop.f32.mrb[5].mxu0  ;;  %vm3133_vm8 = vcmp.gt.f32.partialorder %v6174_v16, 0.0 }
 0x1e1   : > { %4831 = vpow2.f32 %v3194_v8  ;;  %v3164_v63 = vmin.f32 %v6177_v11, 0.0  ;;  %v4537_v27 = vadd.f32 %v2920_v13, %v1591_v26  ;;  %vm3132_vm9 = vcmp.gt.f32.partialorder %v6177_v11, 0.0 }
 0x1e2   : > { %v3200_v30 = vmul.f32 1.442695, %v3165_v51  ;;  %v6182_v35 = vadd.f32 %v4536_v15, %v6166_v33 }
 0x1e3   : > { %v3198_v7 = vmul.f32 1.442695, %v3164_v63  ;;  %v6185_v60 = vadd.f32 %v4537_v27, %v6166_v33  ;;  %v4493_v31 = vpop.f32.mrb[6].mxu0 }
 0x1e4   : > { %4833 = vpow2.f32 %v3200_v30  ;;  %v3167_v34 = vmin.f32 %v6182_v35, 0.0  ;;  %v4538_v24 = vadd.f32 %v4493_v31, %v4243_v10  ;;  %v2930_v23 = vpop.f32.mrb[7].mxu0  ;;  %vm3135_vm10 = vcmp.gt.f32.partialorder %v6182_v35, 0.0 }
 0x1e5   : > { %4835 = vpow2.f32 %v3198_v7  ;;  %v3166_v28 = vmin.f32 %v6185_v60, 0.0  ;;  %v4539_v18 = vadd.f32 %v2930_v23, %v1601_v49  ;;  %vm3134_vm11 = vcmp.gt.f32.partialorder %v6185_v60, 0.0 }
 0x1e6   : > { %v3204_v17 = vmul.f32 1.442695, %v3167_v34  ;;  %v6191_v37 = vadd.f32 %v4538_v24, %v6166_v33 }
 0x1e7   : > { %v3202_v45 = vmul.f32 1.442695, %v3166_v28  ;;  %v6194_v55 = vadd.f32 %v4539_v18, %v6166_v33  ;;  %v4496_v56 = vpop.f32.mrb[8].mxu0 }
 0x1e8   : > { %4837 = vpow2.f32 %v3204_v17  ;;  %v3169_v4 = vmin.f32 %v6191_v37, 0.0  ;;  %v4540_v3 = vadd.f32 %v4496_v56, %v4246_v39  ;;  %v2940_v20 = vpop.f32.mrb[9].mxu0  ;;  %vm3137_vm12 = vcmp.gt.f32.partialorder %v6191_v37, 0.0 }
 0x1e9   : > { %4839 = vpow2.f32 %v3202_v45  ;;  %v3168_v21 = vmin.f32 %v6194_v55, 0.0  ;;  %v4541_v38 = vadd.f32 %v2940_v20, %v1611_v46  ;;  %vm3136_vm13 = vcmp.gt.f32.partialorder %v6194_v55, 0.0 }
 0x1ea   : > { %v4830_v43 = vpop.eup %4829  ;;  %v3208_v57 = vmul.f32 1.442695, %v3169_v4  ;;  %v6201_v61 = vadd.f32 %v4540_v3, %v6166_v33 }
 0x1eb   : > { %v4832_v52 = vpop.eup %4831  ;;  %v3745_v58 = vadd.f32 -1.0, %v4830_v43  ;;  %v3206_v29 = vmul.f32 1.442695, %v3168_v21  ;;  %v6204_v9 = vadd.f32 %v4541_v38, %v6166_v33  ;;  %v4499_v14 = vpop.f32.mrb[10].mxu0 }
 0x1ec   : > { %v3744_v41 = vadd.f32 -1.0, %v4832_v52  ;;  %4841 = vpow2.f32 %v3208_v57  ;;  %v3171_v25 = vmin.f32 %v6201_v61, 0.0  ;;  %v2950_v26 = vpop.f32.mrb[11].mxu0  ;;  %v4542_v19 = vadd.f32 %v4499_v14, %v6151_v42 }
 0x1ed   : > { %v3291_v10 = vsel %vm3131_vm6, %v3099_v53, %v3745_v58  ;;  %4843 = vpow2.f32 %v3206_v29  ;;  %v3170_v49 = vmin.f32 %v6204_v9, 0.0  ;;  %v4543_v22 = vadd.f32 %v2950_v26, %v6153_v0 }
 0x1ee   : > { %v4834_v39 = vpop.eup %4833  ;;  %3324 = vst.msk [vmem:[%s6209_s8 + $0x8] sm:$0xff] %vm3322_vm5, %v3291_v10  ;;  %v3290_v46 = vsel %vm3130_vm7, %v6170_v12, %v3744_v41  ;;  %v3212_v6 = vmul.f32 1.442695, %v3171_v25  ;;  %v6221_v12 = vadd.f32 %v4542_v19, %v6166_v33  ;;  %vm3139_vm14 = vcmp.gt.f32.partialorder %v6201_v61, 0.0 }
 0x1ef   : > { %v4836_v40 = vpop.eup %4835  ;;  %3323 = vst.msk [vmem:[%s6209_s8] sm:$0xff] %vm3322_vm5, %v3290_v46  ;;  %v3747_v53 = vadd.f32 -1.0, %v4834_v39  ;;  %v3210_v48 = vmul.f32 1.442695, %v3170_v49  ;;  %v4502_v47 = vpop.f32.mrb[12].mxu0  ;;  %v6224_v42 = vadd.f32 %v4543_v22, %v6166_v33  ;;  %vm3138_vm15 = vcmp.gt.f32.partialorder %v6204_v9, 0.0 }
 0x1f0   : > { %v3746_v50 = vadd.f32 -1.0, %v4836_v40  ;;  %4845 = vpow2.f32 %v3212_v6  ;;  %v2960_v0 = vpop.f32.mrb[13].mxu0  ;;  %v4544_v44 = vadd.f32 %v4502_v47, %v6155_v2  ;;  %v3173_v1 = vmin.f32 %v6221_v12, 0.0 }
 0x1f1   : > { %v3293_v54 = vsel %vm3133_vm8, %v6174_v16, %v3747_v53  ;;  %4847 = vpow2.f32 %v3210_v48  ;;  %v4545_v36 = vadd.f32 %v2960_v0, %v6157_v5  ;;  %v3172_v13 = vmin.f32 %v6224_v42, 0.0 }
 0x1f2   : > { %v4838_v32 = vpop.eup %4837  ;;  %3326 = vst.msk [vmem:[%s6209_s8 + $0x18] sm:$0xff] %vm3322_vm5, %v3293_v54  ;;  %v3292_v8 = vsel %vm3132_vm9, %v6177_v11, %v3746_v50  ;;  %v6237_v16 = vadd.f32 %v4544_v44, %v6166_v33  ;;  %v3216_v63 = vmul.f32 1.442695, %v3173_v1  ;;  %vm3141_vm0 = vcmp.gt.f32.partialorder %v6221_v12, 0.0 }
 0x1f3   : > { %v4840_v51 = vpop.eup %4839  ;;  %3325 = vst.msk [vmem:[%s6209_s8 + $0x10] sm:$0xff] %vm3322_vm5, %v3292_v8  ;;  %v3749_v15 = vadd.f32 -1.0, %v4838_v32  ;;  %v6240_v2 = vadd.f32 %v4545_v36, %v6166_v33  ;;  %v4505_v5 = vpop.f32.mrb[14].mxu0  ;;  %v3214_v31 = vmul.f32 1.442695, %v3172_v13  ;;  %vm3140_vm1 = vcmp.gt.f32.partialorder %v6224_v42, 0.0 }
 0x1f4   : > { %v3748_v11 = vadd.f32 -1.0, %v4840_v51  ;;  %v4546_v27 = vadd.f32 %v4505_v5, %v6159_v62  ;;  %v2970_v30 = vpop.f32.mrb[15].mxu0  ;;  %v3175_v34 = vmin.f32 %v6237_v16, 0.0  ;;  %4849 = vpow2.f32 %v3216_v63 }
 0x1f5   : > { %v3295_v7 = vsel %vm3135_vm10, %v6182_v35, %v3749_v15  ;;  %v3174_v28 = vmin.f32 %v6240_v2, 0.0  ;;  %4851 = vpow2.f32 %v3214_v31  ;;  %vm3143_vm2 = vcmp.gt.f32.partialorder %v6237_v16, 0.0 }
 0x1f6   : > { %v4842_v24 = vpop.eup %4841  ;;  %3328 = vst.msk [vmem:[%s6209_s8 + $0x28] sm:$0xff] %vm3322_vm5, %v3295_v7  ;;  %v3294_v23 = vsel %vm3134_vm11, %v6185_v60, %v3748_v11  ;;  %v3220_v35 = vmul.f32 1.442695, %v3175_v34  ;;  %v6255_v17 = vadd.f32 %v4546_v27, %v6166_v33  ;;  %v4547_v60 = vadd.f32 %v2970_v30, %v6161_v59 }
 0x1f7   : > { %v4844_v18 = vpop.eup %4843  ;;  %3327 = vst.msk [vmem:[%s6209_s8 + $0x20] sm:$0xff] %vm3322_vm5, %v3294_v23  ;;  %v3751_v62 = vadd.f32 -1.0, %v4842_v24  ;;  %v4308_v45 = vpop.f32.mrb[16].mxu1  ;;  %v3218_v3 = vmul.f32 1.442695, %v3174_v28  ;;  %vm3142_vm3 = vcmp.gt.f32.partialorder %v6240_v2, 0.0 }
 0x1f8   : > { %v4508_v56 = vpop.f32.mrb[16].mxu0  ;;  %v3750_v4 = vadd.f32 -1.0, %v4844_v18  ;;  %v1923_v21 = vpop.f32.mrb[17].mxu1  ;;  %4853 = vpow2.f32 %v3220_v35  ;;  %v3177_v57 = vmin.f32 %v6255_v17, 0.0  ;;  %v6267_v59 = vadd.f32 %v4547_v60, %v6166_v33 }
 0x1f9   : > { %v4548_v20 = vadd.f32 %v4508_v56, %v4308_v45  ;;  %v2980_v38 = vpop.f32.mrb[17].mxu0  ;;  %v3297_v43 = vsel %vm3137_vm12, %v6191_v37, %v3751_v62  ;;  %4855 = vpow2.f32 %v3218_v3  ;;  %vm3145_vm4 = vcmp.gt.f32.partialorder %v6255_v17, 0.0 }
 0x1fa   : > { %v4846_v52 = vpop.eup %4845  ;;  %3330 = vst.msk [vmem:[%s6209_s8 + $0x38] sm:$0xff] %vm3322_vm5, %v3297_v43  ;;  %v3296_v58 = vsel %vm3136_vm13, %v6194_v55, %v3750_v4  ;;  %v3224_v41 = vmul.f32 1.442695, %v3177_v57  ;;  %v4549_v25 = vadd.f32 %v2980_v38, %v1923_v21  ;;  %v3176_v49 = vmin.f32 %v6267_v59, 0.0 }
 0x1fb   : > { %v6270_v29 = vadd.f32 %v4548_v20, %v6166_v33  ;;  %v4848_v14 = vpop.eup %4847  ;;  %3329 = vst.msk [vmem:[%s6209_s8 + $0x30] sm:$0xff] %vm3322_vm5, %v3296_v58  ;;  %v3753_v37 = vadd.f32 -1.0, %v4846_v52  ;;  %v4311_v26 = vpop.f32.mrb[18].mxu1  ;;  %vm3144_vm6 = vcmp.gt.f32.partialorder %v6267_v59, 0.0 }
 0x1fc   : > { %v4511_v10 = vpop.f32.mrb[18].mxu0  ;;  %v3752_v55 = vadd.f32 -1.0, %v4848_v14  ;;  %v1933_v39 = vpop.f32.mrb[19].mxu1  ;;  %4857 = vpow2.f32 %v3224_v41  ;;  %v6280_v22 = vadd.f32 %v4549_v25, %v6166_v33  ;;  %v3222_v53 = vmul.f32 1.442695, %v3176_v49 }
 0x1fd   : > { %v2990_v46 = vpop.f32.mrb[19].mxu0  ;;  %v3299_v6 = vsel %vm3139_vm14, %v6201_v61, %v3753_v37  ;;  %v3179_v19 = vmin.f32 %v6270_v29, 0.0  ;;  %v4550_v48 = vadd.f32 %v4511_v10, %v4311_v26  ;;  %vm3147_vm7 = vcmp.gt.f32.partialorder %v6270_v29, 0.0 }
 0x1fe   : > { %3332 = vst.msk [vmem:[%s6209_s8 + $0x48] sm:$0xff] %vm3322_vm5, %v3299_v6  ;;  %v3298_v40 = vsel %vm3138_vm15, %v6204_v9, %v3752_v55  ;;  %v4551_v47 = vadd.f32 %v2990_v46, %v1933_v39  ;;  %v3178_v0 = vmin.f32 %v6280_v22, 0.0  ;;  %v4850_v44 = vpop.eup %4849  ;;  %4859 = vpow2.f32 %v3222_v53 }
 0x1ff   : > { %3331 = vst.msk [vmem:[%s6209_s8 + $0x40] sm:$0xff] %vm3322_vm5, %v3298_v40  ;;  %v3228_v50 = vmul.f32 1.442695, %v3179_v19  ;;  %v4314_v54 = vpop.f32.mrb[20].mxu1  ;;  %v4514_v61 = vpop.f32.mrb[20].mxu0  ;;  %v6289_v36 = vadd.f32 %v4550_v48, %v6166_v33  ;;  %v3755_v15 = vadd.f32 -1.0, %v4850_v44 }
 0x200   : > { %v6292_v32 = vadd.f32 %v4551_v47, %v6166_v33  ;;  %v4552_v8 = vadd.f32 %v4514_v61, %v4314_v54  ;;  %v1943_v9 = vpop.f32.mrb[21].mxu1  ;;  %v3000_v1 = vpop.f32.mrb[21].mxu0  ;;  %v3226_v13 = vmul.f32 1.442695, %v3178_v0  ;;  %vm3146_vm8 = vcmp.gt.f32.partialorder %v6280_v22, 0.0 }
 0x201   : > { %v4852_v51 = vpop.eup %4851  ;;  %4861 = vpow2.f32 %v3228_v50  ;;  %v4553_v5 = vadd.f32 %v3000_v1, %v1943_v9  ;;  %v3181_v63 = vmin.f32 %v6289_v36, 0.0  ;;  %v3301_v30 = vsel %vm3141_vm0, %v6221_v12, %v3755_v15 }
 0x202   : > { %v3754_v11 = vadd.f32 -1.0, %v4852_v51  ;;  %v4854_v27 = vpop.eup %4853  ;;  %4863 = vpow2.f32 %v3226_v13  ;;  %v3180_v7 = vmin.f32 %v6292_v32, 0.0  ;;  %v6300_v31 = vadd.f32 %v4552_v8, %v6166_v33  ;;  %3334 = vst.msk [vmem:[%s6209_s8 + $0x58] sm:$0xff] %vm3322_vm5, %v3301_v30 }
 0x203   : > { %v4317_v34 = vpop.f32.mrb[22].mxu1  ;;  %v4517_v24 = vpop.f32.mrb[22].mxu0  ;;  %v3757_v18 = vadd.f32 -1.0, %v4854_v27  ;;  %v3232_v62 = vmul.f32 1.442695, %v3181_v63  ;;  %v6306_v35 = vadd.f32 %v4553_v5, %v6166_v33  ;;  %vm3149_vm9 = vcmp.gt.f32.partialorder %v6289_v36, 0.0 }
 0x204   : > { %v4856_v23 = vpop.eup %4855  ;;  %v3300_v28 = vsel %vm3140_vm1, %v6224_v42, %v3754_v11  ;;  %v1953_v12 = vpop.f32.mrb[23].mxu1  ;;  %v3230_v4 = vmul.f32 1.442695, %v3180_v7  ;;  %v3183_v3 = vmin.f32 %v6300_v31, 0.0  ;;  %v4554_v43 = vadd.f32 %v4517_v24, %v4317_v34 }
 0x205   : > { %v3010_v45 = vpop.f32.mrb[23].mxu0  ;;  %3333 = vst.msk [vmem:[%s6209_s8 + $0x50] sm:$0xff] %vm3322_vm5, %v3300_v28  ;;  %v3756_v56 = vadd.f32 -1.0, %v4856_v23  ;;  %v3303_v60 = vsel %vm3143_vm2, %v6237_v16, %v3757_v18  ;;  %4865 = vpow2.f32 %v3232_v62  ;;  %v3182_v42 = vmin.f32 %v6306_v35, 0.0 }
 0x206   : > { %v4858_v20 = vpop.eup %4857  ;;  %3336 = vst.msk [vmem:[%s6209_s8 + $0x68] sm:$0xff] %vm3322_vm5, %v3303_v60  ;;  %4867 = vpow2.f32 %v3230_v4  ;;  %v3236_v38 = vmul.f32 1.442695, %v3183_v3  ;;  %v4555_v14 = vadd.f32 %v3010_v45, %v1953_v12  ;;  %v6322_v26 = vadd.f32 %v4554_v43, %v6166_v33 }
 0x207   : > { %v3302_v21 = vsel %vm3142_vm3, %v6240_v2, %v3756_v56  ;;  %v4320_v57 = vpop.f32.mrb[24].mxu1  ;;  %v4520_v52 = vpop.f32.mrb[24].mxu0  ;;  %v3759_v58 = vadd.f32 -1.0, %v4858_v20  ;;  %v3234_v16 = vmul.f32 1.442695, %v3182_v42  ;;  %vm3148_vm10 = vcmp.gt.f32.partialorder %v6292_v32, 0.0 }
 0x208   : > { %3335 = vst.msk [vmem:[%s6209_s8 + $0x60] sm:$0xff] %vm3322_vm5, %v3302_v21  ;;  %v4556_v37 = vadd.f32 %v4520_v52, %v4320_v57  ;;  %v1963_v41 = vpop.f32.mrb[25].mxu1  ;;  %v3020_v25 = vpop.f32.mrb[25].mxu0  ;;  %4869 = vpow2.f32 %v3236_v38  ;;  %v6326_v49 = vadd.f32 %v4555_v14, %v6166_v33  ;;  %v3185_v19 = vmin.f32 %v6322_v26, 0.0 }
 0x209   : > { %v4557_v2 = vadd.f32 %v3020_v25, %v1963_v41  ;;  %v4860_v10 = vpop.eup %4859  ;;  %v3305_v55 = vsel %vm3145_vm4, %v6255_v17, %v3759_v58  ;;  %4871 = vpow2.f32 %v3234_v16  ;;  %vm3151_vm11 = vcmp.gt.f32.partialorder %v6300_v31, 0.0 }
 0x20a   : > { %v6329_v39 = vadd.f32 %v4556_v37, %v6166_v33  ;;  %3338 = vst.msk [vmem:[%s6209_s8 + $0x78] sm:$0xff] %vm3322_vm5, %v3305_v55  ;;  %v3758_v6 = vadd.f32 -1.0, %v4860_v10  ;;  %v3184_v47 = vmin.f32 %v6326_v49, 0.0  ;;  %v3240_v44 = vmul.f32 1.442695, %v3185_v19 }
 0x20b   : > { %v4862_v46 = vpop.eup %4861  ;;  %v6336_v40 = vadd.f32 %v4557_v2, %v6166_v33  ;;  %v4323_v17 = vpop.f32.mrb[26].mxu1  ;;  %vm3150_vm12 = vcmp.gt.f32.partialorder %v6306_v35, 0.0  ;;  %vm3153_vm13 = vcmp.gt.f32.partialorder %v6322_v26, 0.0  ;;  %vm3152_vm14 = vcmp.gt.f32.partialorder %v6326_v49, 0.0 }
 0x20c   : > { %v4523_v53 = vpop.f32.mrb[26].mxu0  ;;  %v3761_v48 = vadd.f32 -1.0, %v4862_v46  ;;  %v1973_v50 = vpop.f32.mrb[27].mxu1  ;;  %v3304_v61 = vsel %vm3144_vm6, %v6267_v59, %v3758_v6  ;;  %v3187_v8 = vmin.f32 %v6329_v39, 0.0  ;;  %v3238_v51 = vmul.f32 1.442695, %v3184_v47 }
 0x20d   : > { %v3030_v0 = vpop.f32.mrb[27].mxu0  ;;  %v4864_v54 = vpop.eup %4863  ;;  %3337 = vst.msk [vmem:[%s6209_s8 + $0x70] sm:$0xff] %vm3322_vm5, %v3304_v61  ;;  %v3186_v15 = vmin.f32 %v6336_v40, 0.0  ;;  %4873 = vpow2.f32 %v3240_v44  ;;  %v4558_v5 = vadd.f32 %v4523_v53, %v4323_v17  ;;  %vm3155_vm15 = vcmp.gt.f32.partialorder %v6329_v39, 0.0 }
 0x20e   : > { %v3307_v9 = vsel %vm3147_vm7, %v6270_v29, %v3761_v48  ;;  %v3760_v1 = vadd.f32 -1.0, %v4864_v54  ;;  %v3244_v13 = vmul.f32 1.442695, %v3187_v8  ;;  %v4559_v59 = vadd.f32 %v3030_v0, %v1973_v50 }
 0x20f   : > { %3340 = vst.msk [vmem:[%s6209_s8 + $0x88] sm:$0xff] %vm3322_vm5, %v3307_v9  ;;  %v4326_v11 = vpop.f32.mrb[28].mxu1  ;;  %v4526_v63 = vpop.f32.mrb[28].mxu0  ;;  %4875 = vpow2.f32 %v3238_v51  ;;  %v3242_v29 = vmul.f32 1.442695, %v3186_v15  ;;  %v6356_v18 = vadd.f32 %v4558_v5, %v6166_v33  ;;  %vm3154_vm0 = vcmp.gt.f32.partialorder %v6336_v40, 0.0 }
 0x210   : > { %v4866_v27 = vpop.eup %4865  ;;  %v3306_v30 = vsel %vm3146_vm8, %v6280_v22, %v3760_v1  ;;  %v4560_v7 = vadd.f32 %v4526_v63, %v4326_v11  ;;  %v1983_v34 = vpop.f32.mrb[29].mxu1  ;;  %4877 = vpow2.f32 %v3244_v13  ;;  %v6359_v62 = vadd.f32 %v4559_v59, %v6166_v33 }
 0x211   : > { %v3040_v24 = vpop.f32.mrb[29].mxu0  ;;  %v4868_v23 = vpop.eup %4867  ;;  %3339 = vst.msk [vmem:[%s6209_s8 + $0x80] sm:$0xff] %vm3322_vm5, %v3306_v30  ;;  %v3763_v28 = vadd.f32 -1.0, %v4866_v27  ;;  %4879 = vpow2.f32 %v3242_v29  ;;  %v3189_v3 = vmin.f32 %v6356_v18, 0.0  ;;  %vm3157_vm1 = vcmp.gt.f32.partialorder %v6356_v18, 0.0 }
 0x212   : > { %v3762_v12 = vadd.f32 -1.0, %v4868_v23  ;;  %v6362_v22 = vadd.f32 %v4560_v7, %v6166_v33  ;;  %v4561_v45 = vadd.f32 %v3040_v24, %v1983_v34  ;;  %v4870_v56 = vpop.eup %4869  ;;  %v3188_v43 = vmin.f32 %v6359_v62, 0.0 }
 0x213   : > { %v3309_v4 = vsel %vm3149_vm9, %v6289_v36, %v3763_v28  ;;  %v4329_v60 = vpop.f32.mrb[30].mxu1  ;;  %v4529_v42 = vpop.f32.mrb[30].mxu0  ;;  %v3765_v38 = vadd.f32 -1.0, %v4870_v56  ;;  %v3248_v58 = vmul.f32 1.442695, %v3189_v3  ;;  %vm3156_vm2 = vcmp.gt.f32.partialorder %v6359_v62, 0.0 }
 0x214   : > { %v4872_v20 = vpop.eup %4871  ;;  %3342 = vst.msk [vmem:[%s6209_s8 + $0x98] sm:$0xff] %vm3322_vm5, %v3309_v4  ;;  %v3308_v21 = vsel %vm3148_vm10, %v6292_v32, %v3762_v12  ;;  %v1993_v36 = vpop.f32.mrb[31].mxu1  ;;  %v3191_v16 = vmin.f32 %v6362_v22, 0.0  ;;  %v6379_v14 = vadd.f32 %v4561_v45, %v6166_v33  ;;  %v3246_v37 = vmul.f32 1.442695, %v3188_v43 }
 0x215   : > { %v3050_v57 = vpop.f32.mrb[31].mxu0  ;;  %3341 = vst.msk [vmem:[%s6209_s8 + $0x90] sm:$0xff] %vm3322_vm5, %v3308_v21  ;;  %v3764_v52 = vadd.f32 -1.0, %v4872_v20  ;;  %v3311_v32 = vsel %vm3151_vm11, %v6300_v31, %v3765_v38  ;;  %v4562_v41 = vadd.f32 %v4529_v42, %v4329_v60  ;;  %4881 = vpow2.f32 %v3248_v58 }
 0x216   : > { %v4563_v25 = vadd.f32 %v3050_v57, %v1993_v36  ;;  %3344 = vst.msk [vmem:[%s6209_s8 + $0xa8] sm:$0xff] %vm3322_vm5, %v3311_v32  ;;  %v3252_v10 = vmul.f32 1.442695, %v3191_v16  ;;  %4883 = vpow2.f32 %v3246_v37  ;;  %v3190_v55 = vmin.f32 %v6379_v14, 0.0 }
 0x217   : > { %v3310_v2 = vsel %vm3150_vm12, %v6306_v35, %v3764_v52  ;;  %v3129_v46 = vadd.f32 %v4562_v41, %v6166_v33  ;;  %v4874_v31 = vpop.eup %4873  ;;  %vm3159_vm3 = vcmp.gt.f32.partialorder %v6362_v22, 0.0  ;;  %vm3158_vm4 = vcmp.gt.f32.partialorder %v6379_v14, 0.0 }
 0x218   : > { %3343 = vst.msk [vmem:[%s6209_s8 + $0xa0] sm:$0xff] %vm3322_vm5, %v3310_v2  ;;  %v6392_v6 = vadd.f32 %v4563_v25, %v6166_v33  ;;  %4885 = vpow2.f32 %v3252_v10  ;;  %v3767_v17 = vadd.f32 -1.0, %v4874_v31  ;;  %v3250_v53 = vmul.f32 1.442695, %v3190_v55 }
 0x219   : > { %v4876_v19 = vpop.eup %4875  ;;  %v3193_v48 = vmin.f32 %v3129_v46, 0.0  ;;  %vm3161_vm6 = vcmp.gt.f32.partialorder %v3129_v46, 0.0 }
 0x21a   : > { %v4878_v35 = vpop.eup %4877  ;;  %v3766_v47 = vadd.f32 -1.0, %v4876_v19  ;;  %v3192_v50 = vmin.f32 %v6392_v6, 0.0  ;;  %v3313_v33 = vsel %vm3153_vm13, %v6322_v26, %v3767_v17  ;;  %4887 = vpow2.f32 %v3250_v53 }
 0x21b   : > { %v4880_v0 = vpop.eup %4879  ;;  %v3769_v54 = vadd.f32 -1.0, %v4878_v35  ;;  %v3256_v61 = vmul.f32 1.442695, %v3193_v48  ;;  %3346 = vst.msk [vmem:[%s6209_s8 + $0xb8] sm:$0xff] %vm3322_vm5, %v3313_v33  ;;  %vm3160_vm7 = vcmp.gt.f32.partialorder %v6392_v6, 0.0 }
 0x21c   : > { %v3312_v44 = vsel %vm3152_vm14, %v6326_v49, %v3766_v47  ;;  %v3768_v8 = vadd.f32 -1.0, %v4880_v0  ;;  %v3254_v9 = vmul.f32 1.442695, %v3192_v50 }
 0x21d   : > { %3345 = vst.msk [vmem:[%s6209_s8 + $0xb0] sm:$0xff] %vm3322_vm5, %v3312_v44  ;;  %v3315_v1 = vsel %vm3155_vm15, %v6329_v39, %v3769_v54  ;;  %4889 = vpow2.f32 %v3256_v61 }
 0x21e   : > { %3348 = vst.msk [vmem:[%s6209_s8 + $0xc8] sm:$0xff] %vm3322_vm5, %v3315_v1  ;;  %v3314_v26 = vsel %vm3154_vm0, %v6336_v40, %v3768_v8  ;;  %4891 = vpow2.f32 %v3254_v9 }
 0x21f   : > { %3347 = vst.msk [vmem:[%s6209_s8 + $0xc0] sm:$0xff] %vm3322_vm5, %v3314_v26  ;;  %v4882_v49 = vpop.eup %4881 }
 0x220   : > { %v4884_v51 = vpop.eup %4883  ;;  %v3771_v15 = vadd.f32 -1.0, %v4882_v49 }
 0x221   : > { %v3770_v39 = vadd.f32 -1.0, %v4884_v51 }
 0x222   : > { %v4886_v13 = vpop.eup %4885  ;;  %v3317_v5 = vsel %vm3157_vm1, %v6356_v18, %v3771_v15 }
 0x223   : > { %v3773_v59 = vadd.f32 -1.0, %v4886_v13  ;;  %3350 = vst.msk [vmem:[%s6209_s8 + $0xd8] sm:$0xff] %vm3322_vm5, %v3317_v5  ;;  %v3316_v40 = vsel %vm3156_vm2, %v6359_v62, %v3770_v39 }
 0x224   : > { %v4888_v11 = vpop.eup %4887  ;;  %3349 = vst.msk [vmem:[%s6209_s8 + $0xd0] sm:$0xff] %vm3322_vm5, %v3316_v40 }
 0x225   : > { %v3319_v63 = vsel %vm3159_vm3, %v6362_v22, %v3773_v59  ;;  %v3772_v27 = vadd.f32 -1.0, %v4888_v11 }
 0x226   : > { %3352 = vst.msk [vmem:[%s6209_s8 + $0xe8] sm:$0xff] %vm3322_vm5, %v3319_v63 }
 0x227   : > { %v4890_v30 = vpop.eup %4889  ;;  %v3318_v7 = vsel %vm3158_vm4, %v6379_v14, %v3772_v27 }
 0x228   : > { %v4892_v29 = vpop.eup %4891  ;;  %v3775_v34 = vadd.f32 -1.0, %v4890_v30  ;;  %3351 = vst.msk [vmem:[%s6209_s8 + $0xe0] sm:$0xff] %vm3322_vm5, %v3318_v7 }
 0x229   : > { %v3774_v24 = vadd.f32 -1.0, %v4892_v29 }
 0x22a   : > { %v3321_v23 = vsel %vm3161_vm6, %v3129_v46, %v3775_v34 }
 0x22b   : > { %3354 = vst.msk [vmem:[%s6209_s8 + $0xf8] sm:$0xff] %vm3322_vm5, %v3321_v23  ;;  %v3320_v28 = vsel %vm3160_vm7, %v6392_v6, %v3774_v24 }
 0x22c   : > { %3353 = vst.msk [vmem:[%s6209_s8 + $0xf0] sm:$0xff] %vm3322_vm5, %v3320_v28 }
 0x22d   : > { %4907 = shalt.err (!%p4904_p3)
}
 0x22e   : > { %s4908_s27 = scalar_lea.hbm %s6432_s19, 4096  ;;  %s4912_s30 = scalar_lea.hbm %s6488_s3, 8192 }
 0x22f   : > { %p4909_p4 = scmp.ne.s32.totalorder %s6432_s19, %s4908_s27  ;;  %p4913_p9 = scmp.lt.u32.totalorder %s6432_s19, %s6488_s3 }
 0x230   : > { %p4914_p10 = scmp.lt.u32.totalorder %s4912_s30, %s4908_s27  ;;  %p4916_p12 = scmp.lt.u32.totalorder %s4908_s27, %s6432_s19 }
 0x231   : > { %p4910_p7 = pnand %p4909_p4, %p5019_p5 }
 0x232   : > { %p4915_p11 = por %p4914_p10, %p4913_p9 }
 0x233   : > { %p4911_p8 = pneg %p4910_p7 }
 0x234   : > { %p4917_p13 = por %p4916_p12, %p4915_p11 }
 0x236   : > { %p4918_p0 = pnand %p4917_p13, %p4911_p8 }
 0x238   : > { %4921 = shalt.err (!%p4918_p0)
}
 0x239   : > { %s4959_s6 = smov 128   ;;  %s4960_s7 = smov 8  }
 0x23a   : > { %4788 = dma.vmem_to_hbm [thread:$0]  (%p5019_p5), %s6434_s10, 4096, %s6432_s19, %s6444_s16, %s4959_s6, %s4959_s6, %s4960_s7  }
 0x23b PF: > { %p4794_p1 = scmp.ge.s32.totalorder %s4956_s15, 2  ;;  %s3384_s8 = sand.u32 1, %s4944_s12  }
 0x23c   : > { %s3385_s9 = scalar_lea.sflag [#allocation3], %s3384_s8 }
 0x23d   : > { %p4791_p2 = pnand %p4794_p1, %p5023_p6 }
 0x23f   : > { %4939 = dma.done.wait (!%p4791_p2), %s3385_s9, 4096  }
 0x240   : > { %4941 = vsyncadd (!%p4791_p2), %s3385_s9, 4294963200  ;;  %p13_p3 = scmp.ge.s32.totalorder %s5006_s18, 4   ;;  %s6646_s12 = smov %s4948_s13 }
 0x241   : > { %s6647_s13 = smov %s4952_s14  ;;  %s6648_s14 = smov %s5017_s21 }
 0x242   : > { %s6649_s15 = smov %s5006_s18  ;;  %15 = sbr.rel (!%p13_p3) target bundleno = 3 (0x3), region = 75 }
 0x249   :  { %3390 = vsyncpa [#allocation3], 1 }
 0x24a   :  { %3392 = vsyncpa [#allocation3 + $0x1], 1 }

</bundles_post_ra>
